<compile_context>
chip_gen: v7x
topology: tpu7x:2x2x1
jax: 0.10.0
libtpu: 0.0.40
codegen_flags: <defaults>
</compile_context>

<pallas_src>
import functools

import jax
import jax.numpy as jnp
from jax import lax
from jax.experimental import pallas as pl
from jax.experimental.pallas import tpu as pltpu

# --- config (mirrors Network.__init__) ---------------------------------------
BATCH = 2
SEQ = 8
INPUT_SIZE = 16
HIDDEN = 32
NUM_LAYERS = 2          # kernel below is written for exactly 2 layers
OUTPUT_SIZE = 4


# --- fused Pallas kernel ------------------------------------------------------
def _fused_kernel(x_ref, wih_ref, whh_ref, misc_ref, out_ref,
                  *, seq, batch, hidden, in_dim):
    """Whole Network forward in one VMEM-resident kernel.

    x_ref:    (T*B, D)      time-major flattened input (row = t*B + b)
    wih_ref:  (D + 2H, 8H)  rows 0:D    -> layer0 [W_ih_f | W_ih_b] (pre-transposed)
                            rows D:D+2H -> layer1 [W_ih_f | W_ih_b]
    whh_ref:  (4H, 4H)      rows 0:2H   -> layer0 [W_hh_f ; W_hh_b]
                            rows 2H:4H  -> layer1 [W_hh_f ; W_hh_b]
    misc_ref: (3, 8H)       row0 = layer0 [b_f | b_b]  (b_ih + b_hh per direction)
                            row1 = layer1 [b_f | b_b]
                            row2 = [w_head (2H) | b_head (1) | zeros]
    out_ref:  (1, T*B)      logits[..., -1], lane-dense, time-major
    """
    T, B, H, D = seq, batch, hidden, in_dim
    B2, H2, H4, H8 = 2 * B, 2 * H, 4 * H, 8 * H
    f32 = jnp.float32

    x2d = x_ref[...]
    misc = misc_ref[...]
    b0 = misc[0:1, :]                      # (1, 8H)
    b1 = misc[1:2, :]
    w_head = misc[2:3, 0:H2]               # (1, 2H)
    b_head = misc[2:3, H2:H2 + 1]          # (1, 1)

    # Block-diagonal mask packing both directions into one recurrent-matmul LHS:
    # rows 0:B hold [h_f | 0], rows B:2B hold [0 | h_b].
    row = lax.broadcasted_iota(jnp.int32, (B2, H2), 0)
    lane = lax.broadcasted_iota(jnp.int32, (B2, H2), 1)
    blk_mask = (row < B) == (lane < H)

    def bidir_layer(gx_all, whh_stack):
        # gx_all:    (T*B, 8H) hoisted input projections + biases
        #            (lanes 0:4H = fwd gates, 4H:8H = bwd gates)
        # whh_stack: (2H, 4H) = [W_hh_f ; W_hh_b]
        # returns:   (T*B, 2H) layer output (lanes 0:H fwd, H:2H bwd), time-major
        out_f = [None] * T
        out_b = [None] * T
        c = None
        hblk = None
        for s in range(T):                 # fully unrolled, all indices static
            tf = s                         # forward walks t = 0 .. T-1
            tb = T - 1 - s                 # backward walks t = T-1 .. 0
            gx_step = jnp.concatenate(
                [gx_all[tf * B:(tf + 1) * B, 0:H4],
                 gx_all[tb * B:(tb + 1) * B, H4:H8]], axis=0)       # (2B, 4H)
            if s == 0:                     # h0 = c0 = 0 (Network.init_hidden)
                gates = gx_step
            else:
                gates = gx_step + jnp.dot(hblk, whh_stack,
                                          preferred_element_type=f32)
            # One EUP pass per nonlinearity over the packed (2B, 4H) tile, then
            # static lane slices (PyTorch gate order i, f, g, o).
            sig = jax.nn.sigmoid(gates)
            tnh = jnp.tanh(gates)
            i_g = sig[:, 0 * H:1 * H]
            f_g = sig[:, 1 * H:2 * H]
            g_g = tnh[:, 2 * H:3 * H]
            o_g = sig[:, 3 * H:4 * H]
            c = i_g * g_g if s == 0 else f_g * c + i_g * g_g        # (2B, H)
            h = o_g * jnp.tanh(c)                                   # (2B, H)
            out_f[tf] = h[0:B, :]
            out_b[tb] = h[B:B2, :]
            if s + 1 < T:
                # Rebuild the block-diagonal LHS for the next recurrent matmul.
                hblk = jnp.where(blk_mask, jnp.concatenate([h, h], axis=1), 0.0)
        rows = [jnp.concatenate([out_f[t], out_b[t]], axis=1) for t in range(T)]
        return jnp.concatenate(rows, axis=0)                        # (T*B, 2H)

    # ---- layer 0: fused fwd|bwd input projection (one matmul, N = 8H) ----
    gx0 = jnp.dot(x2d, wih_ref[0:D, :], preferred_element_type=f32) + b0
    h1 = bidir_layer(gx0, whh_ref[0:H2, :])

    # ---- layer 1: input is the [fwd | bwd] slab -> single K = 2H matmul ----
    gx1 = jnp.dot(h1, wih_ref[D:D + H2, :], preferred_element_type=f32) + b1
    h2 = bidir_layer(gx1, whh_ref[H2:2 * H2, :])

    # ---- head: only the last Linear output column is returned downstream ----
    # (1, 2H) . (T*B, 2H)^T -> lane-dense (1, T*B) row, single store.
    y = lax.dot_general(w_head, h2, (((1,), (1,)), ((), ())),
                        preferred_element_type=f32)
    out_ref[...] = y + b_head


def _fused_forward_call(x2d, wih_all, whh_all, misc):
    kernel = functools.partial(_fused_kernel, seq=SEQ, batch=BATCH,
                               hidden=HIDDEN, in_dim=INPUT_SIZE)
    vmem = pl.BlockSpec(memory_space=pltpu.MemorySpace.VMEM)
    return pl.pallas_call(
        kernel,
        out_shape=jax.ShapeDtypeStruct((1, SEQ * BATCH), jnp.float32),
        in_specs=[vmem, vmem, vmem, vmem],
        out_specs=vmem,
    )(x2d, wih_all, whh_all, misc)


# --- parameters (deterministic, synthetic) ------------------------------------
def init_params(key):
    params = {"lstm": []}
    bound = float(1.0 / jnp.sqrt(HIDDEN))
    in_dim = INPUT_SIZE
    for _ in range(NUM_LAYERS):
        layer = {}
        for d in ("f", "b"):  # forward / backward directions
            key, k1, k2, k3, k4 = jax.random.split(key, 5)
            w_ih = jax.random.uniform(k1, (4 * HIDDEN, in_dim), jnp.float32, -bound, bound)
            w_hh = jax.random.uniform(k2, (4 * HIDDEN, HIDDEN), jnp.float32, -bound, bound)
            b_ih = jax.random.uniform(k3, (4 * HIDDEN,), jnp.float32, -bound, bound)
            b_hh = jax.random.uniform(k4, (4 * HIDDEN,), jnp.float32, -bound, bound)
            layer[f"w_ih_{d}"] = w_ih.T                    # (in_dim, 4H)
            layer[f"w_hh_{d}"] = w_hh.T                    # (H, 4H)
            layer[f"b_{d}"] = (b_ih + b_hh)[None, :]       # (1, 4H)
        params["lstm"].append(layer)
        in_dim = 2 * HIDDEN
    # Linear(hidden*2 -> output_size), xavier_uniform weight like the module.
    key, kw, kb = jax.random.split(key, 3)
    fan_in, fan_out = 2 * HIDDEN, OUTPUT_SIZE
    limit = float(jnp.sqrt(6.0 / (fan_in + fan_out)))
    w_lin = jax.random.uniform(kw, (OUTPUT_SIZE, 2 * HIDDEN), jnp.float32, -limit, limit)
    lb = float(1.0 / jnp.sqrt(fan_in))
    b_lin = jax.random.uniform(kb, (OUTPUT_SIZE,), jnp.float32, -lb, lb)
    params["w_lin"] = w_lin.T            # (2H, O)
    params["b_lin"] = b_lin[None, :]     # (1, O)
    return params


def _pack_params(params):
    """Pack the 14 per-direction weight/bias arrays into 3 kernel operands."""
    p0, p1 = params["lstm"]
    H2, H8 = 2 * HIDDEN, 8 * HIDDEN
    wih_all = jnp.concatenate([
        jnp.concatenate([p0["w_ih_f"], p0["w_ih_b"]], axis=1),   # (D,  8H)
        jnp.concatenate([p1["w_ih_f"], p1["w_ih_b"]], axis=1),   # (2H, 8H)
    ], axis=0)                                                    # (D + 2H, 8H)
    whh_all = jnp.concatenate(
        [p0["w_hh_f"], p0["w_hh_b"], p1["w_hh_f"], p1["w_hh_b"]], axis=0)   # (4H, 4H)
    b0 = jnp.concatenate([p0["b_f"], p0["b_b"]], axis=1)          # (1, 8H)
    b1 = jnp.concatenate([p1["b_f"], p1["b_b"]], axis=1)          # (1, 8H)
    w_head = params["w_lin"][:, -1].reshape(1, H2)                # last output column
    b_head = params["b_lin"][:, -1:].reshape(1, 1)
    head_row = jnp.concatenate(
        [w_head, b_head, jnp.zeros((1, H8 - H2 - 1), jnp.float32)], axis=1)  # (1, 8H)
    misc = jnp.concatenate([b0, b1, head_row], axis=0)            # (3, 8H)
    return wih_all, whh_all, misc


# --- forward pass (matches Network.forward) -----------------------------------
@jax.jit
def network_forward(x, params):
    """x: (B, T, INPUT_SIZE) batch_first, like PyTorch. Returns (B, T)."""
    B, T, _ = x.shape
    # time-major flatten (row = t*B + b); tiny one-time layout op outside the kernel
    x2d = jnp.transpose(x, (1, 0, 2)).astype(jnp.float32).reshape(T * B, INPUT_SIZE)
    wih_all, whh_all, misc = _pack_params(params)
    y = _fused_forward_call(x2d, wih_all, whh_all, misc)          # (1, T*B)
    return y.reshape(T, B).transpose(1, 0)                        # (B, T)


# --- pure-JAX reference (for correctness check) --------------------------------
def ref_forward(x, params):
    def run_dir(xs, w_ih_t, w_hh_t, b):
        def step(carry, x_t):
            h, c = carry
            gates = x_t @ w_ih_t + h @ w_hh_t + b[0]
            i = jax.nn.sigmoid(gates[:, :HIDDEN])
            f = jax.nn.sigmoid(gates[:, HIDDEN:2 * HIDDEN])
            g = jnp.tanh(gates[:, 2 * HIDDEN:3 * HIDDEN])
            o = jax.nn.sigmoid(gates[:, 3 * HIDDEN:])
            c = f * c + i * g
            h = o * jnp.tanh(c)
            return (h, c), h
        B = xs.shape[1]
        init = (jnp.zeros((B, HIDDEN), jnp.float32), jnp.zeros((B, HIDDEN), jnp.float32))
        _, hs = lax.scan(step, init, xs)
        return hs

    layer_in = jnp.transpose(x, (1, 0, 2)).astype(jnp.float32)
    for l in range(NUM_LAYERS):
        p = params["lstm"][l]
        h_fwd = run_dir(layer_in, p["w_ih_f"], p["w_hh_f"], p["b_f"])
        h_bwd = run_dir(layer_in[::-1], p["w_ih_b"], p["w_hh_b"], p["b_b"])[::-1]
        layer_in = jnp.concatenate([h_fwd, h_bwd], axis=-1)
    logits = jnp.einsum("tbh,ho->tbo", layer_in, params["w_lin"]) + params["b_lin"][0]
    return jnp.transpose(logits, (1, 0, 2))[:, :, -1]


if __name__ == "__main__":
    key = jax.random.PRNGKey(0)
    kx, kp = jax.random.split(key)
    x = jax.random.normal(kx, (BATCH, SEQ, INPUT_SIZE), dtype=jnp.float32)
    params = init_params(kp)

    out = jax.block_until_ready(network_forward(x, params))
    assert out.shape == (BATCH, SEQ), out.shape

    ref = jax.block_until_ready(ref_forward(x, params))
    assert jnp.allclose(out, ref, atol=1e-4, rtol=1e-4), (
        "mismatch vs reference", float(jnp.max(jnp.abs(out - ref))))

    print("KERNEL_OK")
</pallas_src>

<mosaic_0001>
module attributes {stable_mosaic.version = 11 : i64} {
  func.func @_fused_kernel(%arg0: memref<16x16xf32, #tpu.memory_space<vmem>>, %arg1: memref<80x256xf32, #tpu.memory_space<vmem>>, %arg2: memref<128x128xf32, #tpu.memory_space<vmem>>, %arg3: memref<3x256xf32, #tpu.memory_space<vmem>>, %arg4: memref<1x16xf32, #tpu.memory_space<vmem>>) attributes {dimension_semantics = [], scalar_prefetch = 0 : i64, scratch_operands = 0 : i64, tpu.core_type = #tpu.core_type<tc>} {
    %c0 = arith.constant 0 : index
    %c0_0 = arith.constant 0 : index
    %0 = vector.load %arg0[%c0, %c0_0] : memref<16x16xf32, #tpu.memory_space<vmem>>, vector<16x16xf32>
    %c0_1 = arith.constant 0 : index
    %c0_2 = arith.constant 0 : index
    %1 = vector.load %arg3[%c0_1, %c0_2] : memref<3x256xf32, #tpu.memory_space<vmem>>, vector<3x256xf32>
    %2 = vector.extract_strided_slice %1 {offsets = [0, 0], sizes = [1, 256], strides = [1, 1]} : vector<3x256xf32> to vector<1x256xf32>
    %3 = vector.extract_strided_slice %1 {offsets = [1, 0], sizes = [1, 256], strides = [1, 1]} : vector<3x256xf32> to vector<1x256xf32>
    %4 = vector.extract_strided_slice %1 {offsets = [2, 0], sizes = [1, 64], strides = [1, 1]} : vector<3x256xf32> to vector<1x64xf32>
    %5 = vector.extract_strided_slice %1 {offsets = [2, 64], sizes = [1, 1], strides = [1, 1]} : vector<3x256xf32> to vector<1x1xf32>
    %6 = tpu.iota {dimensions = array<i32: 0>} : vector<4x64xi32>
    %7 = tpu.iota {dimensions = array<i32: 1>} : vector<4x64xi32>
    %c2_i32 = arith.constant 2 : i32
    %8 = vector.broadcast %c2_i32 : i32 to vector<4x64xi32>
    %9 = arith.cmpi slt, %6, %8 : vector<4x64xi32>
    %c32_i32 = arith.constant 32 : i32
    %10 = vector.broadcast %c32_i32 : i32 to vector<4x64xi32>
    %11 = arith.cmpi slt, %7, %10 : vector<4x64xi32>
    %12 = arith.xori %9, %11 : vector<4x64xi1>
    %cst = arith.constant dense<true> : vector<4x64xi1>
    %13 = arith.xori %12, %cst : vector<4x64xi1>
    %c0_3 = arith.constant 0 : index
    %c0_4 = arith.constant 0 : index
    %14 = vector.load %arg1[%c0_3, %c0_4] : memref<80x256xf32, #tpu.memory_space<vmem>>, vector<16x256xf32>
    %cst_5 = arith.constant dense<0.000000e+00> : vector<16x256xf32>
    %15 = tpu.matmul %0, %14, %cst_5 {dimension_numbers = #tpu.dot_dimension_numbers<[1], [0], [0], [1], [0, 0, 1, 1], [], []>} : vector<16x16xf32>, vector<16x256xf32>, vector<16x256xf32> -> vector<16x256xf32>
    %16 = vector.broadcast %2 : vector<1x256xf32> to vector<16x256xf32>
    %17 = arith.addf %15, %16 : vector<16x256xf32>
    %c0_6 = arith.constant 0 : index
    %c0_7 = arith.constant 0 : index
    %18 = vector.load %arg2[%c0_6, %c0_7] : memref<128x128xf32, #tpu.memory_space<vmem>>, vector<64x128xf32>
    %19 = vector.extract_strided_slice %17 {offsets = [0, 0], sizes = [2, 128], strides = [1, 1]} : vector<16x256xf32> to vector<2x128xf32>
    %20 = vector.extract_strided_slice %17 {offsets = [14, 128], sizes = [2, 128], strides = [1, 1]} : vector<16x256xf32> to vector<2x128xf32>
    %21 = tpu.concatenate %19, %20 in 0 : vector<2x128xf32>, vector<2x128xf32> -> vector<4x128xf32>
    %22 = arith.negf %21 : vector<4x128xf32>
    %23 = math.exp %22 : vector<4x128xf32>
    %cst_8 = arith.constant 1.000000e+00 : f32
    %24 = vector.broadcast %cst_8 : f32 to vector<4x128xf32>
    %25 = arith.addf %24, %23 : vector<4x128xf32>
    %26 = arith.divf %24, %25 : vector<4x128xf32>
    %27 = math.tanh %21 : vector<4x128xf32>
    %28 = vector.extract_strided_slice %26 {offsets = [0, 0], sizes = [4, 32], strides = [1, 1]} : vector<4x128xf32> to vector<4x32xf32>
    %29 = vector.extract_strided_slice %27 {offsets = [0, 64], sizes = [4, 32], strides = [1, 1]} : vector<4x128xf32> to vector<4x32xf32>
    %30 = vector.extract_strided_slice %26 {offsets = [0, 96], sizes = [4, 32], strides = [1, 1]} : vector<4x128xf32> to vector<4x32xf32>
    %31 = arith.mulf %28, %29 : vector<4x32xf32>
    %32 = math.tanh %31 : vector<4x32xf32>
    %33 = arith.mulf %30, %32 : vector<4x32xf32>
    %34 = vector.extract_strided_slice %33 {offsets = [0, 0], sizes = [2, 32], strides = [1, 1]} : vector<4x32xf32> to vector<2x32xf32>
    %35 = vector.extract_strided_slice %33 {offsets = [2, 0], sizes = [2, 32], strides = [1, 1]} : vector<4x32xf32> to vector<2x32xf32>
    %36 = tpu.concatenate %33, %33 in 1 : vector<4x32xf32>, vector<4x32xf32> -> vector<4x64xf32>
    %cst_9 = arith.constant 0.000000e+00 : f32
    %37 = vector.broadcast %cst_9 : f32 to vector<4x64xf32>
    %38 = arith.select %13, %36, %37 : vector<4x64xi1>, vector<4x64xf32>
    %39 = vector.extract_strided_slice %17 {offsets = [2, 0], sizes = [2, 128], strides = [1, 1]} : vector<16x256xf32> to vector<2x128xf32>
    %40 = vector.extract_strided_slice %17 {offsets = [12, 128], sizes = [2, 128], strides = [1, 1]} : vector<16x256xf32> to vector<2x128xf32>
    %41 = tpu.concatenate %39, %40 in 0 : vector<2x128xf32>, vector<2x128xf32> -> vector<4x128xf32>
    %cst_10 = arith.constant dense<0.000000e+00> : vector<4x128xf32>
    %42 = tpu.matmul %38, %18, %cst_10 {dimension_numbers = #tpu.dot_dimension_numbers<[1], [0], [0], [1], [0, 0, 1, 1], [], []>} : vector<4x64xf32>, vector<64x128xf32>, vector<4x128xf32> -> vector<4x128xf32>
    %43 = arith.addf %41, %42 : vector<4x128xf32>
    %44 = arith.negf %43 : vector<4x128xf32>
    %45 = math.exp %44 : vector<4x128xf32>
    %cst_11 = arith.constant 1.000000e+00 : f32
    %46 = vector.broadcast %cst_11 : f32 to vector<4x128xf32>
    %47 = arith.addf %46, %45 : vector<4x128xf32>
    %48 = arith.divf %46, %47 : vector<4x128xf32>
    %49 = math.tanh %43 : vector<4x128xf32>
    %50 = vector.extract_strided_slice %48 {offsets = [0, 0], sizes = [4, 32], strides = [1, 1]} : vector<4x128xf32> to vector<4x32xf32>
    %51 = vector.extract_strided_slice %48 {offsets = [0, 32], sizes = [4, 32], strides = [1, 1]} : vector<4x128xf32> to vector<4x32xf32>
    %52 = vector.extract_strided_slice %49 {offsets = [0, 64], sizes = [4, 32], strides = [1, 1]} : vector<4x128xf32> to vector<4x32xf32>
    %53 = vector.extract_strided_slice %48 {offsets = [0, 96], sizes = [4, 32], strides = [1, 1]} : vector<4x128xf32> to vector<4x32xf32>
    %54 = arith.mulf %51, %31 : vector<4x32xf32>
    %55 = arith.mulf %50, %52 : vector<4x32xf32>
    %56 = arith.addf %54, %55 : vector<4x32xf32>
    %57 = math.tanh %56 : vector<4x32xf32>
    %58 = arith.mulf %53, %57 : vector<4x32xf32>
    %59 = vector.extract_strided_slice %58 {offsets = [0, 0], sizes = [2, 32], strides = [1, 1]} : vector<4x32xf32> to vector<2x32xf32>
    %60 = vector.extract_strided_slice %58 {offsets = [2, 0], sizes = [2, 32], strides = [1, 1]} : vector<4x32xf32> to vector<2x32xf32>
    %61 = tpu.concatenate %58, %58 in 1 : vector<4x32xf32>, vector<4x32xf32> -> vector<4x64xf32>
    %cst_12 = arith.constant 0.000000e+00 : f32
    %62 = vector.broadcast %cst_12 : f32 to vector<4x64xf32>
    %63 = arith.select %13, %61, %62 : vector<4x64xi1>, vector<4x64xf32>
    %64 = vector.extract_strided_slice %17 {offsets = [4, 0], sizes = [2, 128], strides = [1, 1]} : vector<16x256xf32> to vector<2x128xf32>
    %65 = vector.extract_strided_slice %17 {offsets = [10, 128], sizes = [2, 128], strides = [1, 1]} : vector<16x256xf32> to vector<2x128xf32>
    %66 = tpu.concatenate %64, %65 in 0 : vector<2x128xf32>, vector<2x128xf32> -> vector<4x128xf32>
    %cst_13 = arith.constant dense<0.000000e+00> : vector<4x128xf32>
    %67 = tpu.matmul %63, %18, %cst_13 {dimension_numbers = #tpu.dot_dimension_numbers<[1], [0], [0], [1], [0, 0, 1, 1], [], []>} : vector<4x64xf32>, vector<64x128xf32>, vector<4x128xf32> -> vector<4x128xf32>
    %68 = arith.addf %66, %67 : vector<4x128xf32>
    %69 = arith.negf %68 : vector<4x128xf32>
    %70 = math.exp %69 : vector<4x128xf32>
    %cst_14 = arith.constant 1.000000e+00 : f32
    %71 = vector.broadcast %cst_14 : f32 to vector<4x128xf32>
    %72 = arith.addf %71, %70 : vector<4x128xf32>
    %73 = arith.divf %71, %72 : vector<4x128xf32>
    %74 = math.tanh %68 : vector<4x128xf32>
    %75 = vector.extract_strided_slice %73 {offsets = [0, 0], sizes = [4, 32], strides = [1, 1]} : vector<4x128xf32> to vector<4x32xf32>
    %76 = vector.extract_strided_slice %73 {offsets = [0, 32], sizes = [4, 32], strides = [1, 1]} : vector<4x128xf32> to vector<4x32xf32>
    %77 = vector.extract_strided_slice %74 {offsets = [0, 64], sizes = [4, 32], strides = [1, 1]} : vector<4x128xf32> to vector<4x32xf32>
    %78 = vector.extract_strided_slice %73 {offsets = [0, 96], sizes = [4, 32], strides = [1, 1]} : vector<4x128xf32> to vector<4x32xf32>
    %79 = arith.mulf %76, %56 : vector<4x32xf32>
    %80 = arith.mulf %75, %77 : vector<4x32xf32>
    %81 = arith.addf %79, %80 : vector<4x32xf32>
    %82 = math.tanh %81 : vector<4x32xf32>
    %83 = arith.mulf %78, %82 : vector<4x32xf32>
    %84 = vector.extract_strided_slice %83 {offsets = [0, 0], sizes = [2, 32], strides = [1, 1]} : vector<4x32xf32> to vector<2x32xf32>
    %85 = vector.extract_strided_slice %83 {offsets = [2, 0], sizes = [2, 32], strides = [1, 1]} : vector<4x32xf32> to vector<2x32xf32>
    %86 = tpu.concatenate %83, %83 in 1 : vector<4x32xf32>, vector<4x32xf32> -> vector<4x64xf32>
    %cst_15 = arith.constant 0.000000e+00 : f32
    %87 = vector.broadcast %cst_15 : f32 to vector<4x64xf32>
    %88 = arith.select %13, %86, %87 : vector<4x64xi1>, vector<4x64xf32>
    %89 = vector.extract_strided_slice %17 {offsets = [6, 0], sizes = [2, 128], strides = [1, 1]} : vector<16x256xf32> to vector<2x128xf32>
    %90 = vector.extract_strided_slice %17 {offsets = [8, 128], sizes = [2, 128], strides = [1, 1]} : vector<16x256xf32> to vector<2x128xf32>
    %91 = tpu.concatenate %89, %90 in 0 : vector<2x128xf32>, vector<2x128xf32> -> vector<4x128xf32>
    %cst_16 = arith.constant dense<0.000000e+00> : vector<4x128xf32>
    %92 = tpu.matmul %88, %18, %cst_16 {dimension_numbers = #tpu.dot_dimension_numbers<[1], [0], [0], [1], [0, 0, 1, 1], [], []>} : vector<4x64xf32>, vector<64x128xf32>, vector<4x128xf32> -> vector<4x128xf32>
    %93 = arith.addf %91, %92 : vector<4x128xf32>
    %94 = arith.negf %93 : vector<4x128xf32>
    %95 = math.exp %94 : vector<4x128xf32>
    %cst_17 = arith.constant 1.000000e+00 : f32
    %96 = vector.broadcast %cst_17 : f32 to vector<4x128xf32>
    %97 = arith.addf %96, %95 : vector<4x128xf32>
    %98 = arith.divf %96, %97 : vector<4x128xf32>
    %99 = math.tanh %93 : vector<4x128xf32>
    %100 = vector.extract_strided_slice %98 {offsets = [0, 0], sizes = [4, 32], strides = [1, 1]} : vector<4x128xf32> to vector<4x32xf32>
    %101 = vector.extract_strided_slice %98 {offsets = [0, 32], sizes = [4, 32], strides = [1, 1]} : vector<4x128xf32> to vector<4x32xf32>
    %102 = vector.extract_strided_slice %99 {offsets = [0, 64], sizes = [4, 32], strides = [1, 1]} : vector<4x128xf32> to vector<4x32xf32>
    %103 = vector.extract_strided_slice %98 {offsets = [0, 96], sizes = [4, 32], strides = [1, 1]} : vector<4x128xf32> to vector<4x32xf32>
    %104 = arith.mulf %101, %81 : vector<4x32xf32>
    %105 = arith.mulf %100, %102 : vector<4x32xf32>
    %106 = arith.addf %104, %105 : vector<4x32xf32>
    %107 = math.tanh %106 : vector<4x32xf32>
    %108 = arith.mulf %103, %107 : vector<4x32xf32>
    %109 = vector.extract_strided_slice %108 {offsets = [0, 0], sizes = [2, 32], strides = [1, 1]} : vector<4x32xf32> to vector<2x32xf32>
    %110 = vector.extract_strided_slice %108 {offsets = [2, 0], sizes = [2, 32], strides = [1, 1]} : vector<4x32xf32> to vector<2x32xf32>
    %111 = tpu.concatenate %108, %108 in 1 : vector<4x32xf32>, vector<4x32xf32> -> vector<4x64xf32>
    %cst_18 = arith.constant 0.000000e+00 : f32
    %112 = vector.broadcast %cst_18 : f32 to vector<4x64xf32>
    %113 = arith.select %13, %111, %112 : vector<4x64xi1>, vector<4x64xf32>
    %114 = vector.extract_strided_slice %17 {offsets = [8, 0], sizes = [2, 128], strides = [1, 1]} : vector<16x256xf32> to vector<2x128xf32>
    %115 = vector.extract_strided_slice %17 {offsets = [6, 128], sizes = [2, 128], strides = [1, 1]} : vector<16x256xf32> to vector<2x128xf32>
    %116 = tpu.concatenate %114, %115 in 0 : vector<2x128xf32>, vector<2x128xf32> -> vector<4x128xf32>
    %cst_19 = arith.constant dense<0.000000e+00> : vector<4x128xf32>
    %117 = tpu.matmul %113, %18, %cst_19 {dimension_numbers = #tpu.dot_dimension_numbers<[1], [0], [0], [1], [0, 0, 1, 1], [], []>} : vector<4x64xf32>, vector<64x128xf32>, vector<4x128xf32> -> vector<4x128xf32>
    %118 = arith.addf %116, %117 : vector<4x128xf32>
    %119 = arith.negf %118 : vector<4x128xf32>
    %120 = math.exp %119 : vector<4x128xf32>
    %cst_20 = arith.constant 1.000000e+00 : f32
    %121 = vector.broadcast %cst_20 : f32 to vector<4x128xf32>
    %122 = arith.addf %121, %120 : vector<4x128xf32>
    %123 = arith.divf %121, %122 : vector<4x128xf32>
    %124 = math.tanh %118 : vector<4x128xf32>
    %125 = vector.extract_strided_slice %123 {offsets = [0, 0], sizes = [4, 32], strides = [1, 1]} : vector<4x128xf32> to vector<4x32xf32>
    %126 = vector.extract_strided_slice %123 {offsets = [0, 32], sizes = [4, 32], strides = [1, 1]} : vector<4x128xf32> to vector<4x32xf32>
    %127 = vector.extract_strided_slice %124 {offsets = [0, 64], sizes = [4, 32], strides = [1, 1]} : vector<4x128xf32> to vector<4x32xf32>
    %128 = vector.extract_strided_slice %123 {offsets = [0, 96], sizes = [4, 32], strides = [1, 1]} : vector<4x128xf32> to vector<4x32xf32>
    %129 = arith.mulf %126, %106 : vector<4x32xf32>
    %130 = arith.mulf %125, %127 : vector<4x32xf32>
    %131 = arith.addf %129, %130 : vector<4x32xf32>
    %132 = math.tanh %131 : vector<4x32xf32>
    %133 = arith.mulf %128, %132 : vector<4x32xf32>
    %134 = vector.extract_strided_slice %133 {offsets = [0, 0], sizes = [2, 32], strides = [1, 1]} : vector<4x32xf32> to vector<2x32xf32>
    %135 = vector.extract_strided_slice %133 {offsets = [2, 0], sizes = [2, 32], strides = [1, 1]} : vector<4x32xf32> to vector<2x32xf32>
    %136 = tpu.concatenate %133, %133 in 1 : vector<4x32xf32>, vector<4x32xf32> -> vector<4x64xf32>
    %cst_21 = arith.constant 0.000000e+00 : f32
    %137 = vector.broadcast %cst_21 : f32 to vector<4x64xf32>
    %138 = arith.select %13, %136, %137 : vector<4x64xi1>, vector<4x64xf32>
    %139 = vector.extract_strided_slice %17 {offsets = [10, 0], sizes = [2, 128], strides = [1, 1]} : vector<16x256xf32> to vector<2x128xf32>
    %140 = vector.extract_strided_slice %17 {offsets = [4, 128], sizes = [2, 128], strides = [1, 1]} : vector<16x256xf32> to vector<2x128xf32>
    %141 = tpu.concatenate %139, %140 in 0 : vector<2x128xf32>, vector<2x128xf32> -> vector<4x128xf32>
    %cst_22 = arith.constant dense<0.000000e+00> : vector<4x128xf32>
    %142 = tpu.matmul %138, %18, %cst_22 {dimension_numbers = #tpu.dot_dimension_numbers<[1], [0], [0], [1], [0, 0, 1, 1], [], []>} : vector<4x64xf32>, vector<64x128xf32>, vector<4x128xf32> -> vector<4x128xf32>
    %143 = arith.addf %141, %142 : vector<4x128xf32>
    %144 = arith.negf %143 : vector<4x128xf32>
    %145 = math.exp %144 : vector<4x128xf32>
    %cst_23 = arith.constant 1.000000e+00 : f32
    %146 = vector.broadcast %cst_23 : f32 to vector<4x128xf32>
    %147 = arith.addf %146, %145 : vector<4x128xf32>
    %148 = arith.divf %146, %147 : vector<4x128xf32>
    %149 = math.tanh %143 : vector<4x128xf32>
    %150 = vector.extract_strided_slice %148 {offsets = [0, 0], sizes = [4, 32], strides = [1, 1]} : vector<4x128xf32> to vector<4x32xf32>
    %151 = vector.extract_strided_slice %148 {offsets = [0, 32], sizes = [4, 32], strides = [1, 1]} : vector<4x128xf32> to vector<4x32xf32>
    %152 = vector.extract_strided_slice %149 {offsets = [0, 64], sizes = [4, 32], strides = [1, 1]} : vector<4x128xf32> to vector<4x32xf32>
    %153 = vector.extract_strided_slice %148 {offsets = [0, 96], sizes = [4, 32], strides = [1, 1]} : vector<4x128xf32> to vector<4x32xf32>
    %154 = arith.mulf %151, %131 : vector<4x32xf32>
    %155 = arith.mulf %150, %152 : vector<4x32xf32>
    %156 = arith.addf %154, %155 : vector<4x32xf32>
    %157 = math.tanh %156 : vector<4x32xf32>
    %158 = arith.mulf %153, %157 : vector<4x32xf32>
    %159 = vector.extract_strided_slice %158 {offsets = [0, 0], sizes = [2, 32], strides = [1, 1]} : vector<4x32xf32> to vector<2x32xf32>
    %160 = vector.extract_strided_slice %158 {offsets = [2, 0], sizes = [2, 32], strides = [1, 1]} : vector<4x32xf32> to vector<2x32xf32>
    %161 = tpu.concatenate %158, %158 in 1 : vector<4x32xf32>, vector<4x32xf32> -> vector<4x64xf32>
    %cst_24 = arith.constant 0.000000e+00 : f32
    %162 = vector.broadcast %cst_24 : f32 to vector<4x64xf32>
    %163 = arith.select %13, %161, %162 : vector<4x64xi1>, vector<4x64xf32>
    %164 = vector.extract_strided_slice %17 {offsets = [12, 0], sizes = [2, 128], strides = [1, 1]} : vector<16x256xf32> to vector<2x128xf32>
    %165 = vector.extract_strided_slice %17 {offsets = [2, 128], sizes = [2, 128], strides = [1, 1]} : vector<16x256xf32> to vector<2x128xf32>
    %166 = tpu.concatenate %164, %165 in 0 : vector<2x128xf32>, vector<2x128xf32> -> vector<4x128xf32>
    %cst_25 = arith.constant dense<0.000000e+00> : vector<4x128xf32>
    %167 = tpu.matmul %163, %18, %cst_25 {dimension_numbers = #tpu.dot_dimension_numbers<[1], [0], [0], [1], [0, 0, 1, 1], [], []>} : vector<4x64xf32>, vector<64x128xf32>, vector<4x128xf32> -> vector<4x128xf32>
    %168 = arith.addf %166, %167 : vector<4x128xf32>
    %169 = arith.negf %168 : vector<4x128xf32>
    %170 = math.exp %169 : vector<4x128xf32>
    %cst_26 = arith.constant 1.000000e+00 : f32
    %171 = vector.broadcast %cst_26 : f32 to vector<4x128xf32>
    %172 = arith.addf %171, %170 : vector<4x128xf32>
    %173 = arith.divf %171, %172 : vector<4x128xf32>
    %174 = math.tanh %168 : vector<4x128xf32>
    %175 = vector.extract_strided_slice %173 {offsets = [0, 0], sizes = [4, 32], strides = [1, 1]} : vector<4x128xf32> to vector<4x32xf32>
    %176 = vector.extract_strided_slice %173 {offsets = [0, 32], sizes = [4, 32], strides = [1, 1]} : vector<4x128xf32> to vector<4x32xf32>
    %177 = vector.extract_strided_slice %174 {offsets = [0, 64], sizes = [4, 32], strides = [1, 1]} : vector<4x128xf32> to vector<4x32xf32>
    %178 = vector.extract_strided_slice %173 {offsets = [0, 96], sizes = [4, 32], strides = [1, 1]} : vector<4x128xf32> to vector<4x32xf32>
    %179 = arith.mulf %176, %156 : vector<4x32xf32>
    %180 = arith.mulf %175, %177 : vector<4x32xf32>
    %181 = arith.addf %179, %180 : vector<4x32xf32>
    %182 = math.tanh %181 : vector<4x32xf32>
    %183 = arith.mulf %178, %182 : vector<4x32xf32>
    %184 = vector.extract_strided_slice %183 {offsets = [0, 0], sizes = [2, 32], strides = [1, 1]} : vector<4x32xf32> to vector<2x32xf32>
    %185 = vector.extract_strided_slice %183 {offsets = [2, 0], sizes = [2, 32], strides = [1, 1]} : vector<4x32xf32> to vector<2x32xf32>
    %186 = tpu.concatenate %183, %183 in 1 : vector<4x32xf32>, vector<4x32xf32> -> vector<4x64xf32>
    %cst_27 = arith.constant 0.000000e+00 : f32
    %187 = vector.broadcast %cst_27 : f32 to vector<4x64xf32>
    %188 = arith.select %13, %186, %187 : vector<4x64xi1>, vector<4x64xf32>
    %189 = vector.extract_strided_slice %17 {offsets = [14, 0], sizes = [2, 128], strides = [1, 1]} : vector<16x256xf32> to vector<2x128xf32>
    %190 = vector.extract_strided_slice %17 {offsets = [0, 128], sizes = [2, 128], strides = [1, 1]} : vector<16x256xf32> to vector<2x128xf32>
    %191 = tpu.concatenate %189, %190 in 0 : vector<2x128xf32>, vector<2x128xf32> -> vector<4x128xf32>
    %cst_28 = arith.constant dense<0.000000e+00> : vector<4x128xf32>
    %192 = tpu.matmul %188, %18, %cst_28 {dimension_numbers = #tpu.dot_dimension_numbers<[1], [0], [0], [1], [0, 0, 1, 1], [], []>} : vector<4x64xf32>, vector<64x128xf32>, vector<4x128xf32> -> vector<4x128xf32>
    %193 = arith.addf %191, %192 : vector<4x128xf32>
    %194 = arith.negf %193 : vector<4x128xf32>
    %195 = math.exp %194 : vector<4x128xf32>
    %cst_29 = arith.constant 1.000000e+00 : f32
    %196 = vector.broadcast %cst_29 : f32 to vector<4x128xf32>
    %197 = arith.addf %196, %195 : vector<4x128xf32>
    %198 = arith.divf %196, %197 : vector<4x128xf32>
    %199 = math.tanh %193 : vector<4x128xf32>
    %200 = vector.extract_strided_slice %198 {offsets = [0, 0], sizes = [4, 32], strides = [1, 1]} : vector<4x128xf32> to vector<4x32xf32>
    %201 = vector.extract_strided_slice %198 {offsets = [0, 32], sizes = [4, 32], strides = [1, 1]} : vector<4x128xf32> to vector<4x32xf32>
    %202 = vector.extract_strided_slice %199 {offsets = [0, 64], sizes = [4, 32], strides = [1, 1]} : vector<4x128xf32> to vector<4x32xf32>
    %203 = vector.extract_strided_slice %198 {offsets = [0, 96], sizes = [4, 32], strides = [1, 1]} : vector<4x128xf32> to vector<4x32xf32>
    %204 = arith.mulf %201, %181 : vector<4x32xf32>
    %205 = arith.mulf %200, %202 : vector<4x32xf32>
    %206 = arith.addf %204, %205 : vector<4x32xf32>
    %207 = math.tanh %206 : vector<4x32xf32>
    %208 = arith.mulf %203, %207 : vector<4x32xf32>
    %209 = vector.extract_strided_slice %208 {offsets = [0, 0], sizes = [2, 32], strides = [1, 1]} : vector<4x32xf32> to vector<2x32xf32>
    %210 = vector.extract_strided_slice %208 {offsets = [2, 0], sizes = [2, 32], strides = [1, 1]} : vector<4x32xf32> to vector<2x32xf32>
    %211 = tpu.concatenate %34, %210 in 1 : vector<2x32xf32>, vector<2x32xf32> -> vector<2x64xf32>
    %212 = tpu.concatenate %59, %185 in 1 : vector<2x32xf32>, vector<2x32xf32> -> vector<2x64xf32>
    %213 = tpu.concatenate %84, %160 in 1 : vector<2x32xf32>, vector<2x32xf32> -> vector<2x64xf32>
    %214 = tpu.concatenate %109, %135 in 1 : vector<2x32xf32>, vector<2x32xf32> -> vector<2x64xf32>
    %215 = tpu.concatenate %134, %110 in 1 : vector<2x32xf32>, vector<2x32xf32> -> vector<2x64xf32>
    %216 = tpu.concatenate %159, %85 in 1 : vector<2x32xf32>, vector<2x32xf32> -> vector<2x64xf32>
    %217 = tpu.concatenate %184, %60 in 1 : vector<2x32xf32>, vector<2x32xf32> -> vector<2x64xf32>
    %218 = tpu.concatenate %209, %35 in 1 : vector<2x32xf32>, vector<2x32xf32> -> vector<2x64xf32>
    %219 = tpu.concatenate %211, %212, %213, %214, %215, %216, %217, %218 in 0 : vector<2x64xf32>, vector<2x64xf32>, vector<2x64xf32>, vector<2x64xf32>, vector<2x64xf32>, vector<2x64xf32>, vector<2x64xf32>, vector<2x64xf32> -> vector<16x64xf32>
    %c16 = arith.constant 16 : index
    %c0_30 = arith.constant 0 : index
    %220 = vector.load %arg1[%c16, %c0_30] : memref<80x256xf32, #tpu.memory_space<vmem>>, vector<64x256xf32>
    %cst_31 = arith.constant dense<0.000000e+00> : vector<16x256xf32>
    %221 = tpu.matmul %219, %220, %cst_31 {dimension_numbers = #tpu.dot_dimension_numbers<[1], [0], [0], [1], [0, 0, 1, 1], [], []>} : vector<16x64xf32>, vector<64x256xf32>, vector<16x256xf32> -> vector<16x256xf32>
    %222 = vector.broadcast %3 : vector<1x256xf32> to vector<16x256xf32>
    %223 = arith.addf %221, %222 : vector<16x256xf32>
    %c64 = arith.constant 64 : index
    %c0_32 = arith.constant 0 : index
    %224 = vector.load %arg2[%c64, %c0_32] : memref<128x128xf32, #tpu.memory_space<vmem>>, vector<64x128xf32>
    %225 = vector.extract_strided_slice %223 {offsets = [0, 0], sizes = [2, 128], strides = [1, 1]} : vector<16x256xf32> to vector<2x128xf32>
    %226 = vector.extract_strided_slice %223 {offsets = [14, 128], sizes = [2, 128], strides = [1, 1]} : vector<16x256xf32> to vector<2x128xf32>
    %227 = tpu.concatenate %225, %226 in 0 : vector<2x128xf32>, vector<2x128xf32> -> vector<4x128xf32>
    %228 = arith.negf %227 : vector<4x128xf32>
    %229 = math.exp %228 : vector<4x128xf32>
    %cst_33 = arith.constant 1.000000e+00 : f32
    %230 = vector.broadcast %cst_33 : f32 to vector<4x128xf32>
    %231 = arith.addf %230, %229 : vector<4x128xf32>
    %232 = arith.divf %230, %231 : vector<4x128xf32>
    %233 = math.tanh %227 : vector<4x128xf32>
    %234 = vector.extract_strided_slice %232 {offsets = [0, 0], sizes = [4, 32], strides = [1, 1]} : vector<4x128xf32> to vector<4x32xf32>
    %235 = vector.extract_strided_slice %233 {offsets = [0, 64], sizes = [4, 32], strides = [1, 1]} : vector<4x128xf32> to vector<4x32xf32>
    %236 = vector.extract_strided_slice %232 {offsets = [0, 96], sizes = [4, 32], strides = [1, 1]} : vector<4x128xf32> to vector<4x32xf32>
    %237 = arith.mulf %234, %235 : vector<4x32xf32>
    %238 = math.tanh %237 : vector<4x32xf32>
    %239 = arith.mulf %236, %238 : vector<4x32xf32>
    %240 = vector.extract_strided_slice %239 {offsets = [0, 0], sizes = [2, 32], strides = [1, 1]} : vector<4x32xf32> to vector<2x32xf32>
    %241 = vector.extract_strided_slice %239 {offsets = [2, 0], sizes = [2, 32], strides = [1, 1]} : vector<4x32xf32> to vector<2x32xf32>
    %242 = tpu.concatenate %239, %239 in 1 : vector<4x32xf32>, vector<4x32xf32> -> vector<4x64xf32>
    %cst_34 = arith.constant 0.000000e+00 : f32
    %243 = vector.broadcast %cst_34 : f32 to vector<4x64xf32>
    %244 = arith.select %13, %242, %243 : vector<4x64xi1>, vector<4x64xf32>
    %245 = vector.extract_strided_slice %223 {offsets = [2, 0], sizes = [2, 128], strides = [1, 1]} : vector<16x256xf32> to vector<2x128xf32>
    %246 = vector.extract_strided_slice %223 {offsets = [12, 128], sizes = [2, 128], strides = [1, 1]} : vector<16x256xf32> to vector<2x128xf32>
    %247 = tpu.concatenate %245, %246 in 0 : vector<2x128xf32>, vector<2x128xf32> -> vector<4x128xf32>
    %cst_35 = arith.constant dense<0.000000e+00> : vector<4x128xf32>
    %248 = tpu.matmul %244, %224, %cst_35 {dimension_numbers = #tpu.dot_dimension_numbers<[1], [0], [0], [1], [0, 0, 1, 1], [], []>} : vector<4x64xf32>, vector<64x128xf32>, vector<4x128xf32> -> vector<4x128xf32>
    %249 = arith.addf %247, %248 : vector<4x128xf32>
    %250 = arith.negf %249 : vector<4x128xf32>
    %251 = math.exp %250 : vector<4x128xf32>
    %cst_36 = arith.constant 1.000000e+00 : f32
    %252 = vector.broadcast %cst_36 : f32 to vector<4x128xf32>
    %253 = arith.addf %252, %251 : vector<4x128xf32>
    %254 = arith.divf %252, %253 : vector<4x128xf32>
    %255 = math.tanh %249 : vector<4x128xf32>
    %256 = vector.extract_strided_slice %254 {offsets = [0, 0], sizes = [4, 32], strides = [1, 1]} : vector<4x128xf32> to vector<4x32xf32>
    %257 = vector.extract_strided_slice %254 {offsets = [0, 32], sizes = [4, 32], strides = [1, 1]} : vector<4x128xf32> to vector<4x32xf32>
    %258 = vector.extract_strided_slice %255 {offsets = [0, 64], sizes = [4, 32], strides = [1, 1]} : vector<4x128xf32> to vector<4x32xf32>
    %259 = vector.extract_strided_slice %254 {offsets = [0, 96], sizes = [4, 32], strides = [1, 1]} : vector<4x128xf32> to vector<4x32xf32>
    %260 = arith.mulf %257, %237 : vector<4x32xf32>
    %261 = arith.mulf %256, %258 : vector<4x32xf32>
    %262 = arith.addf %260, %261 : vector<4x32xf32>
    %263 = math.tanh %262 : vector<4x32xf32>
    %264 = arith.mulf %259, %263 : vector<4x32xf32>
    %265 = vector.extract_strided_slice %264 {offsets = [0, 0], sizes = [2, 32], strides = [1, 1]} : vector<4x32xf32> to vector<2x32xf32>
    %266 = vector.extract_strided_slice %264 {offsets = [2, 0], sizes = [2, 32], strides = [1, 1]} : vector<4x32xf32> to vector<2x32xf32>
    %267 = tpu.concatenate %264, %264 in 1 : vector<4x32xf32>, vector<4x32xf32> -> vector<4x64xf32>
    %cst_37 = arith.constant 0.000000e+00 : f32
    %268 = vector.broadcast %cst_37 : f32 to vector<4x64xf32>
    %269 = arith.select %13, %267, %268 : vector<4x64xi1>, vector<4x64xf32>
    %270 = vector.extract_strided_slice %223 {offsets = [4, 0], sizes = [2, 128], strides = [1, 1]} : vector<16x256xf32> to vector<2x128xf32>
    %271 = vector.extract_strided_slice %223 {offsets = [10, 128], sizes = [2, 128], strides = [1, 1]} : vector<16x256xf32> to vector<2x128xf32>
    %272 = tpu.concatenate %270, %271 in 0 : vector<2x128xf32>, vector<2x128xf32> -> vector<4x128xf32>
    %cst_38 = arith.constant dense<0.000000e+00> : vector<4x128xf32>
    %273 = tpu.matmul %269, %224, %cst_38 {dimension_numbers = #tpu.dot_dimension_numbers<[1], [0], [0], [1], [0, 0, 1, 1], [], []>} : vector<4x64xf32>, vector<64x128xf32>, vector<4x128xf32> -> vector<4x128xf32>
    %274 = arith.addf %272, %273 : vector<4x128xf32>
    %275 = arith.negf %274 : vector<4x128xf32>
    %276 = math.exp %275 : vector<4x128xf32>
    %cst_39 = arith.constant 1.000000e+00 : f32
    %277 = vector.broadcast %cst_39 : f32 to vector<4x128xf32>
    %278 = arith.addf %277, %276 : vector<4x128xf32>
    %279 = arith.divf %277, %278 : vector<4x128xf32>
    %280 = math.tanh %274 : vector<4x128xf32>
    %281 = vector.extract_strided_slice %279 {offsets = [0, 0], sizes = [4, 32], strides = [1, 1]} : vector<4x128xf32> to vector<4x32xf32>
    %282 = vector.extract_strided_slice %279 {offsets = [0, 32], sizes = [4, 32], strides = [1, 1]} : vector<4x128xf32> to vector<4x32xf32>
    %283 = vector.extract_strided_slice %280 {offsets = [0, 64], sizes = [4, 32], strides = [1, 1]} : vector<4x128xf32> to vector<4x32xf32>
    %284 = vector.extract_strided_slice %279 {offsets = [0, 96], sizes = [4, 32], strides = [1, 1]} : vector<4x128xf32> to vector<4x32xf32>
    %285 = arith.mulf %282, %262 : vector<4x32xf32>
    %286 = arith.mulf %281, %283 : vector<4x32xf32>
    %287 = arith.addf %285, %286 : vector<4x32xf32>
    %288 = math.tanh %287 : vector<4x32xf32>
    %289 = arith.mulf %284, %288 : vector<4x32xf32>
    %290 = vector.extract_strided_slice %289 {offsets = [0, 0], sizes = [2, 32], strides = [1, 1]} : vector<4x32xf32> to vector<2x32xf32>
    %291 = vector.extract_strided_slice %289 {offsets = [2, 0], sizes = [2, 32], strides = [1, 1]} : vector<4x32xf32> to vector<2x32xf32>
    %292 = tpu.concatenate %289, %289 in 1 : vector<4x32xf32>, vector<4x32xf32> -> vector<4x64xf32>
    %cst_40 = arith.constant 0.000000e+00 : f32
    %293 = vector.broadcast %cst_40 : f32 to vector<4x64xf32>
    %294 = arith.select %13, %292, %293 : vector<4x64xi1>, vector<4x64xf32>
    %295 = vector.extract_strided_slice %223 {offsets = [6, 0], sizes = [2, 128], strides = [1, 1]} : vector<16x256xf32> to vector<2x128xf32>
    %296 = vector.extract_strided_slice %223 {offsets = [8, 128], sizes = [2, 128], strides = [1, 1]} : vector<16x256xf32> to vector<2x128xf32>
    %297 = tpu.concatenate %295, %296 in 0 : vector<2x128xf32>, vector<2x128xf32> -> vector<4x128xf32>
    %cst_41 = arith.constant dense<0.000000e+00> : vector<4x128xf32>
    %298 = tpu.matmul %294, %224, %cst_41 {dimension_numbers = #tpu.dot_dimension_numbers<[1], [0], [0], [1], [0, 0, 1, 1], [], []>} : vector<4x64xf32>, vector<64x128xf32>, vector<4x128xf32> -> vector<4x128xf32>
    %299 = arith.addf %297, %298 : vector<4x128xf32>
    %300 = arith.negf %299 : vector<4x128xf32>
    %301 = math.exp %300 : vector<4x128xf32>
    %cst_42 = arith.constant 1.000000e+00 : f32
    %302 = vector.broadcast %cst_42 : f32 to vector<4x128xf32>
    %303 = arith.addf %302, %301 : vector<4x128xf32>
    %304 = arith.divf %302, %303 : vector<4x128xf32>
    %305 = math.tanh %299 : vector<4x128xf32>
    %306 = vector.extract_strided_slice %304 {offsets = [0, 0], sizes = [4, 32], strides = [1, 1]} : vector<4x128xf32> to vector<4x32xf32>
    %307 = vector.extract_strided_slice %304 {offsets = [0, 32], sizes = [4, 32], strides = [1, 1]} : vector<4x128xf32> to vector<4x32xf32>
    %308 = vector.extract_strided_slice %305 {offsets = [0, 64], sizes = [4, 32], strides = [1, 1]} : vector<4x128xf32> to vector<4x32xf32>
    %309 = vector.extract_strided_slice %304 {offsets = [0, 96], sizes = [4, 32], strides = [1, 1]} : vector<4x128xf32> to vector<4x32xf32>
    %310 = arith.mulf %307, %287 : vector<4x32xf32>
    %311 = arith.mulf %306, %308 : vector<4x32xf32>
    %312 = arith.addf %310, %311 : vector<4x32xf32>
    %313 = math.tanh %312 : vector<4x32xf32>
    %314 = arith.mulf %309, %313 : vector<4x32xf32>
    %315 = vector.extract_strided_slice %314 {offsets = [0, 0], sizes = [2, 32], strides = [1, 1]} : vector<4x32xf32> to vector<2x32xf32>
    %316 = vector.extract_strided_slice %314 {offsets = [2, 0], sizes = [2, 32], strides = [1, 1]} : vector<4x32xf32> to vector<2x32xf32>
    %317 = tpu.concatenate %314, %314 in 1 : vector<4x32xf32>, vector<4x32xf32> -> vector<4x64xf32>
    %cst_43 = arith.constant 0.000000e+00 : f32
    %318 = vector.broadcast %cst_43 : f32 to vector<4x64xf32>
    %319 = arith.select %13, %317, %318 : vector<4x64xi1>, vector<4x64xf32>
    %320 = vector.extract_strided_slice %223 {offsets = [8, 0], sizes = [2, 128], strides = [1, 1]} : vector<16x256xf32> to vector<2x128xf32>
    %321 = vector.extract_strided_slice %223 {offsets = [6, 128], sizes = [2, 128], strides = [1, 1]} : vector<16x256xf32> to vector<2x128xf32>
    %322 = tpu.concatenate %320, %321 in 0 : vector<2x128xf32>, vector<2x128xf32> -> vector<4x128xf32>
    %cst_44 = arith.constant dense<0.000000e+00> : vector<4x128xf32>
    %323 = tpu.matmul %319, %224, %cst_44 {dimension_numbers = #tpu.dot_dimension_numbers<[1], [0], [0], [1], [0, 0, 1, 1], [], []>} : vector<4x64xf32>, vector<64x128xf32>, vector<4x128xf32> -> vector<4x128xf32>
    %324 = arith.addf %322, %323 : vector<4x128xf32>
    %325 = arith.negf %324 : vector<4x128xf32>
    %326 = math.exp %325 : vector<4x128xf32>
    %cst_45 = arith.constant 1.000000e+00 : f32
    %327 = vector.broadcast %cst_45 : f32 to vector<4x128xf32>
    %328 = arith.addf %327, %326 : vector<4x128xf32>
    %329 = arith.divf %327, %328 : vector<4x128xf32>
    %330 = math.tanh %324 : vector<4x128xf32>
    %331 = vector.extract_strided_slice %329 {offsets = [0, 0], sizes = [4, 32], strides = [1, 1]} : vector<4x128xf32> to vector<4x32xf32>
    %332 = vector.extract_strided_slice %329 {offsets = [0, 32], sizes = [4, 32], strides = [1, 1]} : vector<4x128xf32> to vector<4x32xf32>
    %333 = vector.extract_strided_slice %330 {offsets = [0, 64], sizes = [4, 32], strides = [1, 1]} : vector<4x128xf32> to vector<4x32xf32>
    %334 = vector.extract_strided_slice %329 {offsets = [0, 96], sizes = [4, 32], strides = [1, 1]} : vector<4x128xf32> to vector<4x32xf32>
    %335 = arith.mulf %332, %312 : vector<4x32xf32>
    %336 = arith.mulf %331, %333 : vector<4x32xf32>
    %337 = arith.addf %335, %336 : vector<4x32xf32>
    %338 = math.tanh %337 : vector<4x32xf32>
    %339 = arith.mulf %334, %338 : vector<4x32xf32>
    %340 = vector.extract_strided_slice %339 {offsets = [0, 0], sizes = [2, 32], strides = [1, 1]} : vector<4x32xf32> to vector<2x32xf32>
    %341 = vector.extract_strided_slice %339 {offsets = [2, 0], sizes = [2, 32], strides = [1, 1]} : vector<4x32xf32> to vector<2x32xf32>
    %342 = tpu.concatenate %339, %339 in 1 : vector<4x32xf32>, vector<4x32xf32> -> vector<4x64xf32>
    %cst_46 = arith.constant 0.000000e+00 : f32
    %343 = vector.broadcast %cst_46 : f32 to vector<4x64xf32>
    %344 = arith.select %13, %342, %343 : vector<4x64xi1>, vector<4x64xf32>
    %345 = vector.extract_strided_slice %223 {offsets = [10, 0], sizes = [2, 128], strides = [1, 1]} : vector<16x256xf32> to vector<2x128xf32>
    %346 = vector.extract_strided_slice %223 {offsets = [4, 128], sizes = [2, 128], strides = [1, 1]} : vector<16x256xf32> to vector<2x128xf32>
    %347 = tpu.concatenate %345, %346 in 0 : vector<2x128xf32>, vector<2x128xf32> -> vector<4x128xf32>
    %cst_47 = arith.constant dense<0.000000e+00> : vector<4x128xf32>
    %348 = tpu.matmul %344, %224, %cst_47 {dimension_numbers = #tpu.dot_dimension_numbers<[1], [0], [0], [1], [0, 0, 1, 1], [], []>} : vector<4x64xf32>, vector<64x128xf32>, vector<4x128xf32> -> vector<4x128xf32>
    %349 = arith.addf %347, %348 : vector<4x128xf32>
    %350 = arith.negf %349 : vector<4x128xf32>
    %351 = math.exp %350 : vector<4x128xf32>
    %cst_48 = arith.constant 1.000000e+00 : f32
    %352 = vector.broadcast %cst_48 : f32 to vector<4x128xf32>
    %353 = arith.addf %352, %351 : vector<4x128xf32>
    %354 = arith.divf %352, %353 : vector<4x128xf32>
    %355 = math.tanh %349 : vector<4x128xf32>
    %356 = vector.extract_strided_slice %354 {offsets = [0, 0], sizes = [4, 32], strides = [1, 1]} : vector<4x128xf32> to vector<4x32xf32>
    %357 = vector.extract_strided_slice %354 {offsets = [0, 32], sizes = [4, 32], strides = [1, 1]} : vector<4x128xf32> to vector<4x32xf32>
    %358 = vector.extract_strided_slice %355 {offsets = [0, 64], sizes = [4, 32], strides = [1, 1]} : vector<4x128xf32> to vector<4x32xf32>
    %359 = vector.extract_strided_slice %354 {offsets = [0, 96], sizes = [4, 32], strides = [1, 1]} : vector<4x128xf32> to vector<4x32xf32>
    %360 = arith.mulf %357, %337 : vector<4x32xf32>
    %361 = arith.mulf %356, %358 : vector<4x32xf32>
    %362 = arith.addf %360, %361 : vector<4x32xf32>
    %363 = math.tanh %362 : vector<4x32xf32>
    %364 = arith.mulf %359, %363 : vector<4x32xf32>
    %365 = vector.extract_strided_slice %364 {offsets = [0, 0], sizes = [2, 32], strides = [1, 1]} : vector<4x32xf32> to vector<2x32xf32>
    %366 = vector.extract_strided_slice %364 {offsets = [2, 0], sizes = [2, 32], strides = [1, 1]} : vector<4x32xf32> to vector<2x32xf32>
    %367 = tpu.concatenate %364, %364 in 1 : vector<4x32xf32>, vector<4x32xf32> -> vector<4x64xf32>
    %cst_49 = arith.constant 0.000000e+00 : f32
    %368 = vector.broadcast %cst_49 : f32 to vector<4x64xf32>
    %369 = arith.select %13, %367, %368 : vector<4x64xi1>, vector<4x64xf32>
    %370 = vector.extract_strided_slice %223 {offsets = [12, 0], sizes = [2, 128], strides = [1, 1]} : vector<16x256xf32> to vector<2x128xf32>
    %371 = vector.extract_strided_slice %223 {offsets = [2, 128], sizes = [2, 128], strides = [1, 1]} : vector<16x256xf32> to vector<2x128xf32>
    %372 = tpu.concatenate %370, %371 in 0 : vector<2x128xf32>, vector<2x128xf32> -> vector<4x128xf32>
    %cst_50 = arith.constant dense<0.000000e+00> : vector<4x128xf32>
    %373 = tpu.matmul %369, %224, %cst_50 {dimension_numbers = #tpu.dot_dimension_numbers<[1], [0], [0], [1], [0, 0, 1, 1], [], []>} : vector<4x64xf32>, vector<64x128xf32>, vector<4x128xf32> -> vector<4x128xf32>
    %374 = arith.addf %372, %373 : vector<4x128xf32>
    %375 = arith.negf %374 : vector<4x128xf32>
    %376 = math.exp %375 : vector<4x128xf32>
    %cst_51 = arith.constant 1.000000e+00 : f32
    %377 = vector.broadcast %cst_51 : f32 to vector<4x128xf32>
    %378 = arith.addf %377, %376 : vector<4x128xf32>
    %379 = arith.divf %377, %378 : vector<4x128xf32>
    %380 = math.tanh %374 : vector<4x128xf32>
    %381 = vector.extract_strided_slice %379 {offsets = [0, 0], sizes = [4, 32], strides = [1, 1]} : vector<4x128xf32> to vector<4x32xf32>
    %382 = vector.extract_strided_slice %379 {offsets = [0, 32], sizes = [4, 32], strides = [1, 1]} : vector<4x128xf32> to vector<4x32xf32>
    %383 = vector.extract_strided_slice %380 {offsets = [0, 64], sizes = [4, 32], strides = [1, 1]} : vector<4x128xf32> to vector<4x32xf32>
    %384 = vector.extract_strided_slice %379 {offsets = [0, 96], sizes = [4, 32], strides = [1, 1]} : vector<4x128xf32> to vector<4x32xf32>
    %385 = arith.mulf %382, %362 : vector<4x32xf32>
    %386 = arith.mulf %381, %383 : vector<4x32xf32>
    %387 = arith.addf %385, %386 : vector<4x32xf32>
    %388 = math.tanh %387 : vector<4x32xf32>
    %389 = arith.mulf %384, %388 : vector<4x32xf32>
    %390 = vector.extract_strided_slice %389 {offsets = [0, 0], sizes = [2, 32], strides = [1, 1]} : vector<4x32xf32> to vector<2x32xf32>
    %391 = vector.extract_strided_slice %389 {offsets = [2, 0], sizes = [2, 32], strides = [1, 1]} : vector<4x32xf32> to vector<2x32xf32>
    %392 = tpu.concatenate %389, %389 in 1 : vector<4x32xf32>, vector<4x32xf32> -> vector<4x64xf32>
    %cst_52 = arith.constant 0.000000e+00 : f32
    %393 = vector.broadcast %cst_52 : f32 to vector<4x64xf32>
    %394 = arith.select %13, %392, %393 : vector<4x64xi1>, vector<4x64xf32>
    %395 = vector.extract_strided_slice %223 {offsets = [14, 0], sizes = [2, 128], strides = [1, 1]} : vector<16x256xf32> to vector<2x128xf32>
    %396 = vector.extract_strided_slice %223 {offsets = [0, 128], sizes = [2, 128], strides = [1, 1]} : vector<16x256xf32> to vector<2x128xf32>
    %397 = tpu.concatenate %395, %396 in 0 : vector<2x128xf32>, vector<2x128xf32> -> vector<4x128xf32>
    %cst_53 = arith.constant dense<0.000000e+00> : vector<4x128xf32>
    %398 = tpu.matmul %394, %224, %cst_53 {dimension_numbers = #tpu.dot_dimension_numbers<[1], [0], [0], [1], [0, 0, 1, 1], [], []>} : vector<4x64xf32>, vector<64x128xf32>, vector<4x128xf32> -> vector<4x128xf32>
    %399 = arith.addf %397, %398 : vector<4x128xf32>
    %400 = arith.negf %399 : vector<4x128xf32>
    %401 = math.exp %400 : vector<4x128xf32>
    %cst_54 = arith.constant 1.000000e+00 : f32
    %402 = vector.broadcast %cst_54 : f32 to vector<4x128xf32>
    %403 = arith.addf %402, %401 : vector<4x128xf32>
    %404 = arith.divf %402, %403 : vector<4x128xf32>
    %405 = math.tanh %399 : vector<4x128xf32>
    %406 = vector.extract_strided_slice %404 {offsets = [0, 0], sizes = [4, 32], strides = [1, 1]} : vector<4x128xf32> to vector<4x32xf32>
    %407 = vector.extract_strided_slice %404 {offsets = [0, 32], sizes = [4, 32], strides = [1, 1]} : vector<4x128xf32> to vector<4x32xf32>
    %408 = vector.extract_strided_slice %405 {offsets = [0, 64], sizes = [4, 32], strides = [1, 1]} : vector<4x128xf32> to vector<4x32xf32>
    %409 = vector.extract_strided_slice %404 {offsets = [0, 96], sizes = [4, 32], strides = [1, 1]} : vector<4x128xf32> to vector<4x32xf32>
    %410 = arith.mulf %407, %387 : vector<4x32xf32>
    %411 = arith.mulf %406, %408 : vector<4x32xf32>
    %412 = arith.addf %410, %411 : vector<4x32xf32>
    %413 = math.tanh %412 : vector<4x32xf32>
    %414 = arith.mulf %409, %413 : vector<4x32xf32>
    %415 = vector.extract_strided_slice %414 {offsets = [0, 0], sizes = [2, 32], strides = [1, 1]} : vector<4x32xf32> to vector<2x32xf32>
    %416 = vector.extract_strided_slice %414 {offsets = [2, 0], sizes = [2, 32], strides = [1, 1]} : vector<4x32xf32> to vector<2x32xf32>
    %417 = tpu.concatenate %240, %416 in 1 : vector<2x32xf32>, vector<2x32xf32> -> vector<2x64xf32>
    %418 = tpu.concatenate %265, %391 in 1 : vector<2x32xf32>, vector<2x32xf32> -> vector<2x64xf32>
    %419 = tpu.concatenate %290, %366 in 1 : vector<2x32xf32>, vector<2x32xf32> -> vector<2x64xf32>
    %420 = tpu.concatenate %315, %341 in 1 : vector<2x32xf32>, vector<2x32xf32> -> vector<2x64xf32>
    %421 = tpu.concatenate %340, %316 in 1 : vector<2x32xf32>, vector<2x32xf32> -> vector<2x64xf32>
    %422 = tpu.concatenate %365, %291 in 1 : vector<2x32xf32>, vector<2x32xf32> -> vector<2x64xf32>
    %423 = tpu.concatenate %390, %266 in 1 : vector<2x32xf32>, vector<2x32xf32> -> vector<2x64xf32>
    %424 = tpu.concatenate %415, %241 in 1 : vector<2x32xf32>, vector<2x32xf32> -> vector<2x64xf32>
    %425 = tpu.concatenate %417, %418, %419, %420, %421, %422, %423, %424 in 0 : vector<2x64xf32>, vector<2x64xf32>, vector<2x64xf32>, vector<2x64xf32>, vector<2x64xf32>, vector<2x64xf32>, vector<2x64xf32>, vector<2x64xf32> -> vector<16x64xf32>
    %cst_55 = arith.constant dense<0.000000e+00> : vector<1x16xf32>
    %426 = tpu.matmul %4, %425, %cst_55 {dimension_numbers = #tpu.dot_dimension_numbers<[1], [1], [0], [0], [0, 0, 1, 0], [], []>} : vector<1x64xf32>, vector<16x64xf32>, vector<1x16xf32> -> vector<1x16xf32>
    %427 = vector.broadcast %5 : vector<1x1xf32> to vector<1x16xf32>
    %428 = arith.addf %426, %427 : vector<1x16xf32>
    %c0_56 = arith.constant 0 : index
    %c0_57 = arith.constant 0 : index
    %429 = vector.load %arg4[%c0_56, %c0_57] : memref<1x16xf32, #tpu.memory_space<vmem>>, vector<1x16xf32>
    tpu.vector_store %arg4[%c0_56, %c0_57], %428 {strides = array<i32>} : memref<1x16xf32, #tpu.memory_space<vmem>>, vector<1x16xf32>,
    return
  }
}

</mosaic_0001>

<bundles_post_ra>
// kernel: network_forward.1
= control target key start
LH: loop header
LB: loop body
LE: loop exit
PB: predicated region body
PF: predicated region fallthrough
CT: control target
= control target key end

     0   :  { %v2918_v3 = vmov 0.0   ;;  %vm51_vm0 = vcmask 130048   ;;  %v20_v9 = vlaneseq  ;;  %vm146_vm1 = vcmask 1041408   ;;  %s2921_s11 = smov 96   ;;  %s2923_s20 = smov 32   ;;  %s3601_s1 = inlined_call_operand.vmem [shape: f32[80,256], index: 1, kind: input, shape index: {}]   ;;  %s3602_s0 = inlined_call_operand.vmem [shape: f32[16,16], index: 0, kind: input, shape index: {}]   ;;  %s3603_s3 = inlined_call_operand.vmem [shape: f32[3,256], index: 3, kind: input, shape index: {}]   ;;  %s3604_s2 = inlined_call_operand.vmem [shape: f32[128,128], index: 2, kind: input, shape index: {}]   ;;  %s3605_s4 = inlined_call_operand.vmem [shape: f32[1,16], index: 4, kind: output, shape index: {}]  }
   0x1   :  { %v29_v0 = vld [vmem:[%s3601_s1 + $0x8] sm:$0xff]  ;;  %v31_v1 = vld [vmem:[%s3601_s1 + $0x18] sm:$0xff]  ;;  %v28_v2 = vld [vmem:[%s3601_s1] sm:$0xff]  ;;  %122 = vmatprep.mubr.f32.mxu0 %v2918_v3  ;;  %v2920_v53 = vmov 0.0|0.0   ;;  %vm2922_vm2 = vmmov 0   ;;  %vm173_vm6 = vcmask 261120  }
   0x2   :  { %v2567_v4 = vpack.c.bf16 %v31_v1, %v29_v0  ;;  %v30_v5 = vld [vmem:[%s3601_s1 + $0x10] sm:$0xff]  ;;  %v17_v7 = vld [vmem:[%s3602_s0] sm:$0xff]  ;;  %v18_v8 = vld [vmem:[%s3602_s0 + $0x8] sm:$0xff]  ;;  %v2973_v10 = vshrl.u32 %v20_v9, 7  ;;  %s2919_s0 = smov 64   ;;  %2571 = vmatprep.subr.bf16.mxu1 %v2920_v53  ;;  %2310 = vmatprep.mubr.msk.f32.mxu1 %vm2922_vm2, %v2918_v3  ;;  %vm2924_vm7 = vmmov 1  }
   0x3   :  { %v2569_v6 = vpack.c.bf16 %v30_v5, %v28_v2  ;;  %v2979_v12 = vld [vmem:[%s3603_s3] sm:$0x77]  ;;  %v136_v55 = vld [vmem:[%s3604_s2 + $0x8] sm:$0xff]  ;;  %v137_v56 = vld [vmem:[%s3604_s2 + $0x10] sm:$0xff]  ;;  %vm182_vm9 = vcmask 523264   ;;  %vm1018_vm10 = vcmask 1045504  }
   0x4   :  { %2568 = vmatprep.subr.bf16.mxu0 %v2567_v4  ;;  %v35_v11 = vsub.s32 0, %v2973_v10  ;;  %v39_v13 = vsub.s32 4, %v2973_v10  ;;  %v135_v54 = vld [vmem:[%s3604_s2] sm:$0xff]  ;;  %v138_v59 = vld [vmem:[%s3604_s2 + $0x18] sm:$0xff]  ;;  %v140_v62 = vld [vmem:[%s3604_s2 + $0x28] sm:$0xff]  ;;  %vm24_vm3 = vcmp.lt.s32.totalorder %v2973_v10, 2 }
   0x5   :  { %2570 = vmatpush1.bf16.msra.mxu0 %v2569_v6  ;;  %v3018_v58 = vpack.c.bf16 %v136_v55, %v135_v54  ;;  %v3025_v60 = vpack.c.bf16 %v138_v59, %v137_v56  ;;  %v139_v61 = vld [vmem:[%s3604_s2 + $0x20] sm:$0xff]  ;;  %v141_v0 = vld [vmem:[%s3604_s2 + $0x30] sm:$0xff]  ;;  %v142_v1 = vld [vmem:[%s3604_s2 + $0x38] sm:$0xff]  ;;  %v23_v6 = vand.u32 127, %v20_v9  ;;  %vm1016_vm11 = vcmask 1043456  }
   0x6   :  { %v36_v14 = vrot.slane %v2979_v12, %v35_v11  ;;  %v40_v15 = vrot.slane %v2979_v12, %v39_v13  ;;  %2583 = vmatprep.subr.bf16.mxu0 %v2920_v53  ;;  %v3037_v63 = vpack.c.bf16 %v140_v62, %v139_v61  ;;  %v3052_v2 = vpack.c.bf16 %v142_v1, %v141_v0  ;;  %vm2757_vm12 = vmpackc.low %vm182_vm9, %vm182_vm9 }
   0x7   :  { %2573 = vmatpush3.bf16.msra.mxu1 %v3018_v58  ;;  %vm25_vm4 = vcmp.lt.s32.totalorder %v23_v6, 32  ;;  %vm2122_vm13 = vcmask 122880  }
   0x8   :  { %2128 = vmatmul.mubr.msk.f32.vlgmr.msra.gmra.mrb[0].mxu0 %vm51_vm0, %v17_v7  ;;  %v46_v16 = vrot.slane %v36_v14, %v35_v11  ;;  %v50_v17 = vrot.slane %v40_v15, %v35_v11  ;;  %2574 = vmatprep.subr.bf16.mxu1 %v2920_v53  ;;  %vm26_vm5 = vmxor %vm24_vm3, %vm25_vm4 }
   0x9   :  { %128 = vmatprep.mubr.f32.mxu0 %v2918_v3  ;;  %2585 = vmatpush3.bf16.msra.mxu0 %v3018_v58  ;;  %vm3073_vm8 = vmxor %vm26_vm5, %vm2924_vm7 }
   0xa   :  { %2586 = vmatprep.subr.bf16.mxu0 %v2920_v53 }
   0xb   :  { %2576 = vmatpush3.bf16.msra.mxu1 %v3025_v60 }
   0xc   :  { %2129 = vmatmul.mubr.msk.f32.gmra.mrb[2].mxu0 %vm51_vm0, %v18_v8  ;;  %2577 = vmatprep.subr.bf16.mxu1 %v2920_v53 }
   0xd   :  { %2588 = vmatpush3.bf16.msra.mxu0 %v3025_v60  ;;  %2329 = vmatprep.mubr.msk.f32.mxu0 %vm2922_vm2, %v2918_v3 }
   0xe   :  { %2589 = vmatprep.subr.bf16.mxu0 %v2920_v53 }
   0xf   :  { %2579 = vmatpush3.bf16.msra.mxu1 %v3037_v63 }
  0x10   :  { %2580 = vmatprep.subr.bf16.mxu1 %v2920_v53 }
  0x11   :  { %2591 = vmatpush3.bf16.msra.mxu0 %v3037_v63 }
  0x12   :  { %2592 = vmatprep.subr.bf16.mxu0 %v2920_v53 }
  0x13   :  { %2582 = vmatpush3.bf16.msra.mxu1 %v3052_v2 }
  0x14   :  { %2595 = vmatprep.subr.bf16.mxu1 %v2920_v53 }
  0x15   :  { %2594 = vmatpush3.bf16.msra.mxu0 %v3052_v2 }
  0x16   :  { %2607 = vmatprep.subr.bf16.mxu0 %v2920_v53 }
  0xdb   :  { %v124_v18 = vpop.f32.mrb[0].mxu0 }
  0xdc   :  { %v125_v19 = vadd.f32 %v124_v18, %v46_v16  ;;  %v126_v20 = vpop.f32.mrb[1].mxu0 }
  0xdd   :  { %v127_v21 = vadd.f32 %v126_v20, %v50_v17 }
  0xde   :  { %v177_v26 = vrot.slane %v125_v19, 2  ;;  %v294_v27 = vrot.slane %v125_v19, 4  ;;  %v404_v29 = vrot.slane %v125_v19, 6 }
  0xdf   :  { %v130_v22 = vpop.f32.mrb[2].mxu0  ;;  %v517_v23 = vrot.slane %v127_v21, 4  ;;  %v630_v30 = vrot.slane %v127_v21, 2  ;;  %v852_v31 = vrot.slane %v127_v21, 6 }
  0xe0   :  { %v131_v24 = vadd.f32 %v130_v22, %v46_v16  ;;  %v132_v25 = vpop.f32.mrb[3].mxu0 }
  0xe1   :  { %v133_v28 = vadd.f32 %v132_v25, %v50_v17 }
  0xe2   :  { %v2985_v32 = vsel %vm146_vm1, %v131_v24, %v517_v23  ;;  %v628_v33 = vrot.slane %v131_v24, 2  ;;  %v740_v34 = vrot.slane %v131_v24, 4  ;;  %v850_v35 = vrot.slane %v131_v24, 6 }
  0xe3   :  { %v144_v36 = vrot.slane %v133_v28, 4  ;;  %v179_v37 = vrot.slane %v133_v28, 2  ;;  %v2988_v38 = vsel %vm146_vm1, %v294_v27, %v133_v28  ;;  %v406_v39 = vrot.slane %v133_v28, 6 }
  0xe4   :  { %v2991_v40 = vsel %vm146_vm1, %v628_v33, %v630_v30  ;;  %v2994_v41 = vsel %vm146_vm1, %v740_v34, %v127_v21  ;;  %v2997_v42 = vsel %vm146_vm1, %v850_v35, %v852_v31 }
  0xe5   :  { %v147_v43 = vsel %vm146_vm1, %v125_v19, %v144_v36  ;;  %v3001_v44 = vsel %vm146_vm1, %v177_v26, %v179_v37  ;;  %v3004_v45 = vsel %vm146_vm1, %v404_v29, %v406_v39 }
  0xe6   :  { %2789 = vtanh.f32 %v147_v43  ;;  %v2130_v47 = vmul.f32 -1.442695, %v147_v43 }
  0xe8   :  { %2791 = vpow2.f32 %v2130_v47 }
  0xf0   :  { %v2790_v46 = vpop.eup %2789 }
  0xf1   :  { %156 = vrot.lane.b32.xlu0 %v2790_v46, %s2919_s0 }
  0xf2   :  { %v2792_v48 = vpop.eup %2791 }
  0xf3   :  { %v151_v49 = vadd.f32 1.0, %v2792_v48 }
  0xf5   :  { %2793 = vrcp.f32 %v151_v49 }
  0xff   :  { %v2794_v50 = vpop.eup %2793 }
 0x163   :  { %v157_v51 = vpop.permute.xlu0 %156 }
 0x164   :  { %v159_v52 = vmul.f32 %v2794_v50, %v157_v51 }
 0x166   :  { %2795 = vtanh.f32 %v159_v52 }
 0x170   :  { %v2796_v57 = vpop.eup %2795 }
 0x171   :  { %162 = vrot.lane.b32.xlu0 %v2796_v57, %s2921_s11 }
 0x1e3   :  { %v163_v4 = vpop.permute.xlu0 %162 }
 0x1e4   :  { %v3062_v5 = vmul.f32 %v2794_v50, %v163_v4 }
 0x1e6   :  { %167 = vrot.lane.b32.xlu1 %v3062_v5, %s2923_s20 }
 0x1ea   :  { %170 = vrot.lane.b32.xlu1 %v3062_v5, %s2919_s0 }
 0x1ee   :  { %265 = vrot.lane.b32.xlu1 %v159_v52, %s2923_s20 }
 0x258   :  { %v3071_v7 = vpop.permute.xlu1 %167 }
 0x25c   :  { %v171_v11 = vpop.permute.xlu1 %170 }
 0x25d   :  { %v174_v13 = vsel %vm173_vm6, %v3071_v7, %v171_v11 }
 0x25e   :  { %v175_v9 = vsel %vm3073_vm8, %v174_v13, 0.0 }
 0x25f   :  { %2311 = vmatmul.mubr.msk.f32.vlgmr.msra.gmra.mrb[0].mxu1 %vm182_vm9, %v175_v9 }
 0x260   :  { %2597 = vmatpush3.bf16.msra.mxu1 %v3018_v58  ;;  %2348 = vmatprep.mubr.msk.f32.mxu1 %vm2922_vm2, %v2918_v3  ;;  %v266_v24 = vpop.permute.xlu1 %265 }
 0x261   :  { %2598 = vmatprep.subr.bf16.mxu1 %v2920_v53 }
 0x264   :  { %2600 = vmatpush3.bf16.msra.mxu1 %v3025_v60 }
 0x265   :  { %2601 = vmatprep.subr.bf16.mxu1 %v2920_v53 }
 0x268   :  { %2603 = vmatpush3.bf16.msra.mxu1 %v3037_v63 }
 0x269   :  { %2604 = vmatprep.subr.bf16.mxu1 %v2920_v53 }
 0x26c   :  { %2606 = vmatpush3.bf16.msra.mxu1 %v3052_v2 }
 0x26d   :  { %2619 = vmatprep.subr.bf16.mxu1 %v2920_v53 }
 0x332   :  { %v252_v14 = vpop.f32.mrb[0].mxu1 }
 0x333   :  { %v256_v15 = vadd.f32 %v252_v14, %v3001_v44  ;;  %v2312_v16 = vpop.f32.mrb[1].mxu1 }
 0x335   :  { %2797 = vtanh.f32 %v256_v15  ;;  %v2132_v18 = vmul.f32 -1.442695, %v256_v15 }
 0x337   :  { %2799 = vpow2.f32 %v2132_v18 }
 0x33f   :  { %v2798_v17 = vpop.eup %2797 }
 0x340   :  { %270 = vrot.lane.b32.xlu0 %v2798_v17, %s2919_s0 }
 0x341   :  { %v2800_v19 = vpop.eup %2799 }
 0x342   :  { %v260_v20 = vadd.f32 1.0, %v2800_v19 }
 0x344   :  { %2801 = vrcp.f32 %v260_v20 }
 0x34e   :  { %v2802_v21 = vpop.eup %2801 }
 0x34f   :  { %v268_v25 = vmul.f32 %v2802_v21, %v266_v24 }
 0x3b2   :  { %v271_v22 = vpop.permute.xlu0 %270 }
 0x3b3   :  { %v273_v23 = vmul.f32 %v2802_v21, %v271_v22 }
 0x3b5   :  { %275 = vrot.lane.b32.xlu0 %v273_v23, %s2923_s20 }
 0x427   :  { %v276_v26 = vpop.permute.xlu0 %275 }
 0x428   :  { %v278_v27 = vadd.f32 %v276_v26, %v268_v25 }
 0x42a   :  { %2803 = vtanh.f32 %v278_v27 }
 0x434   :  { %v2804_v28 = vpop.eup %2803 }
 0x435   :  { %281 = vrot.lane.b32.xlu1 %v2804_v28, %s2919_s0 }
 0x4a7   :  { %v282_v29 = vpop.permute.xlu1 %281 }
 0x4a8   :  { %v3096_v30 = vmul.f32 %v2802_v21, %v282_v29 }
 0x4aa   :  { %289 = vrot.lane.b32.xlu1 %v3096_v30, %s2919_s0  ;;  %286 = vrot.lane.b32.xlu0 %v3096_v30, %s2923_s20 }
 0x51c   :  { %v290_v31 = vpop.permute.xlu1 %289  ;;  %v3102_v33 = vpop.permute.xlu0 %286 }
 0x51d   :  { %v292_v34 = vsel %vm173_vm6, %v3102_v33, %v290_v31 }
 0x51e   :  { %v293_v35 = vsel %vm3073_vm8, %v292_v34, 0.0 }
 0x51f   :  { %2330 = vmatmul.mubr.msk.f32.vlgmr.msra.gmra.mrb[4].mxu0 %vm182_vm9, %v293_v35 }
 0x520   :  { %2609 = vmatpush3.bf16.msra.mxu0 %v3018_v58  ;;  %2367 = vmatprep.mubr.msk.f32.mxu0 %vm2922_vm2, %v2918_v3 }
 0x521   :  { %2610 = vmatprep.subr.bf16.mxu0 %v2920_v53 }
 0x524   :  { %2612 = vmatpush3.bf16.msra.mxu0 %v3025_v60 }
 0x525   :  { %2613 = vmatprep.subr.bf16.mxu0 %v2920_v53 }
 0x528   :  { %2615 = vmatpush3.bf16.msra.mxu0 %v3037_v63 }
 0x529   :  { %2616 = vmatprep.subr.bf16.mxu0 %v2920_v53 }
 0x52c   :  { %2618 = vmatpush3.bf16.msra.mxu0 %v3052_v2 }
 0x52d   :  { %2631 = vmatprep.subr.bf16.mxu0 %v2920_v53 }
 0x5f2   :  { %v366_v36 = vpop.f32.mrb[4].mxu0 }
 0x5f3   :  { %v370_v37 = vadd.f32 %v366_v36, %v2988_v38  ;;  %v2331_v39 = vpop.f32.mrb[5].mxu0 }
 0x5f5   :  { %2805 = vtanh.f32 %v370_v37  ;;  %v2134_v44 = vmul.f32 -1.442695, %v370_v37 }
 0x5f7   :  { %2807 = vpow2.f32 %v2134_v44 }
 0x5ff   :  { %v2806_v43 = vpop.eup %2805 }
 0x600   :  { %380 = vrot.lane.b32.xlu0 %v2806_v43, %s2919_s0 }
 0x601   :  { %v2808_v46 = vpop.eup %2807 }
 0x602   :  { %v374_v47 = vadd.f32 1.0, %v2808_v46 }
 0x604   :  { %2809 = vrcp.f32 %v374_v47 }
 0x60e   :  { %v2810_v48 = vpop.eup %2809 }
 0x60f   :  { %v378_v51 = vmul.f32 %v2810_v48, %v278_v27 }
 0x672   :  { %v381_v49 = vpop.permute.xlu0 %380 }
 0x673   :  { %v383_v50 = vmul.f32 %v2810_v48, %v381_v49 }
 0x675   :  { %385 = vrot.lane.b32.xlu1 %v383_v50, %s2923_s20 }
 0x6e7   :  { %v386_v52 = vpop.permute.xlu1 %385 }
 0x6e8   :  { %v388_v54 = vadd.f32 %v386_v52, %v378_v51 }
 0x6ea   :  { %2811 = vtanh.f32 %v388_v54 }
 0x6f4   :  { %v2812_v38 = vpop.eup %2811 }
 0x6f5   :  { %391 = vrot.lane.b32.xlu0 %v2812_v38, %s2919_s0 }
 0x767   :  { %v392_v55 = vpop.permute.xlu0 %391 }
 0x768   :  { %v3123_v56 = vmul.f32 %v2810_v48, %v392_v55 }
 0x76a   :  { %399 = vrot.lane.b32.xlu0 %v3123_v56, %s2919_s0  ;;  %396 = vrot.lane.b32.xlu1 %v3123_v56, %s2923_s20 }
 0x7dc   :  { %v400_v57 = vpop.permute.xlu0 %399  ;;  %v3129_v59 = vpop.permute.xlu1 %396 }
 0x7dd   :  { %v402_v61 = vsel %vm173_vm6, %v3129_v59, %v400_v57 }
 0x7de   :  { %v403_v62 = vsel %vm3073_vm8, %v402_v61, 0.0 }
 0x7df   :  { %2349 = vmatmul.mubr.msk.f32.vlgmr.msra.gmra.mrb[2].mxu1 %vm182_vm9, %v403_v62 }
 0x7e0   :  { %2621 = vmatpush3.bf16.msra.mxu1 %v3018_v58  ;;  %2386 = vmatprep.mubr.msk.f32.mxu1 %vm2922_vm2, %v2918_v3 }
 0x7e1   :  { %2622 = vmatprep.subr.bf16.mxu1 %v2920_v53 }
 0x7e4   :  { %2624 = vmatpush3.bf16.msra.mxu1 %v3025_v60 }
 0x7e5   :  { %2625 = vmatprep.subr.bf16.mxu1 %v2920_v53 }
 0x7e8   :  { %2627 = vmatpush3.bf16.msra.mxu1 %v3037_v63 }
 0x7e9   :  { %2628 = vmatprep.subr.bf16.mxu1 %v2920_v53 }
 0x7ec   :  { %2630 = vmatpush3.bf16.msra.mxu1 %v3052_v2 }
 0x7ed   :  { %2643 = vmatprep.subr.bf16.mxu1 %v2920_v53 }
 0x8b2   :  { %v478_v0 = vpop.f32.mrb[2].mxu1 }
 0x8b3   :  { %v482_v1 = vadd.f32 %v478_v0, %v3004_v45  ;;  %v2350_v4 = vpop.f32.mrb[3].mxu1 }
 0x8b5   :  { %2813 = vtanh.f32 %v482_v1  ;;  %v2136_v11 = vmul.f32 -1.442695, %v482_v1 }
 0x8b7   :  { %2815 = vpow2.f32 %v2136_v11 }
 0x8bf   :  { %v2814_v6 = vpop.eup %2813 }
 0x8c0   :  { %492 = vrot.lane.b32.xlu1 %v2814_v6, %s2919_s0 }
 0x8c1   :  { %v2816_v13 = vpop.eup %2815 }
 0x8c2   :  { %v486_v9 = vadd.f32 1.0, %v2816_v13 }
 0x8c4   :  { %2817 = vrcp.f32 %v486_v9 }
 0x8ce   :  { %v2818_v14 = vpop.eup %2817 }
 0x8cf   :  { %v490_v17 = vmul.f32 %v2818_v14, %v388_v54 }
 0x932   :  { %v493_v15 = vpop.permute.xlu1 %492 }
 0x933   :  { %v495_v16 = vmul.f32 %v2818_v14, %v493_v15 }
 0x935   :  { %497 = vrot.lane.b32.xlu0 %v495_v16, %s2923_s20 }
 0x9a7   :  { %v498_v18 = vpop.permute.xlu0 %497 }
 0x9a8   :  { %v500_v19 = vadd.f32 %v498_v18, %v490_v17 }
 0x9aa   :  { %2819 = vtanh.f32 %v500_v19 }
 0x9b4   :  { %v2820_v45 = vpop.eup %2819 }
 0x9b5   :  { %503 = vrot.lane.b32.xlu1 %v2820_v45, %s2919_s0 }
 0xa27   :  { %v504_v20 = vpop.permute.xlu1 %503 }
 0xa28   :  { %v3150_v21 = vmul.f32 %v2818_v14, %v504_v20 }
 0xa2a   :  { %511 = vrot.lane.b32.xlu1 %v3150_v21, %s2919_s0  ;;  %508 = vrot.lane.b32.xlu0 %v3150_v21, %s2923_s20 }
 0xa9c   :  { %v512_v22 = vpop.permute.xlu1 %511  ;;  %v3156_v23 = vpop.permute.xlu0 %508 }
 0xa9d   :  { %v514_v24 = vsel %vm173_vm6, %v3156_v23, %v512_v22 }
 0xa9e   :  { %v515_v25 = vsel %vm3073_vm8, %v514_v24, 0.0 }
 0xa9f   :  { %2368 = vmatmul.mubr.msk.f32.vlgmr.msra.gmra.mrb[6].mxu0 %vm182_vm9, %v515_v25 }
 0xaa0   :  { %2633 = vmatpush3.bf16.msra.mxu0 %v3018_v58  ;;  %2405 = vmatprep.mubr.msk.f32.mxu0 %vm2922_vm2, %v2918_v3 }
 0xaa1   :  { %2634 = vmatprep.subr.bf16.mxu0 %v2920_v53 }
 0xaa4   :  { %2636 = vmatpush3.bf16.msra.mxu0 %v3025_v60 }
 0xaa5   :  { %2637 = vmatprep.subr.bf16.mxu0 %v2920_v53 }
 0xaa8   :  { %2639 = vmatpush3.bf16.msra.mxu0 %v3037_v63 }
 0xaa9   :  { %2640 = vmatprep.subr.bf16.mxu0 %v2920_v53 }
 0xaac   :  { %2642 = vmatpush3.bf16.msra.mxu0 %v3052_v2 }
 0xb72   :  { %v589_v26 = vpop.f32.mrb[6].mxu0 }
 0xb73   :  { %v593_v27 = vadd.f32 %v589_v26, %v2985_v32  ;;  %v2369_v28 = vpop.f32.mrb[7].mxu0 }
 0xb75   :  { %2821 = vtanh.f32 %v593_v27  ;;  %v2138_v31 = vmul.f32 -1.442695, %v593_v27 }
 0xb77   :  { %2823 = vpow2.f32 %v2138_v31 }
 0xb7f   :  { %v2822_v29 = vpop.eup %2821 }
 0xb80   :  { %603 = vrot.lane.b32.xlu0 %v2822_v29, %s2919_s0 }
 0xb81   :  { %v2824_v34 = vpop.eup %2823 }
 0xb82   :  { %v597_v35 = vadd.f32 1.0, %v2824_v34 }
 0xb84   :  { %2825 = vrcp.f32 %v597_v35 }
 0xb8e   :  { %v2826_v36 = vpop.eup %2825 }
 0xb8f   :  { %v601_v43 = vmul.f32 %v2826_v36, %v500_v19 }
 0xbf2   :  { %v604_v37 = vpop.permute.xlu0 %603 }
 0xbf3   :  { %v606_v39 = vmul.f32 %v2826_v36, %v604_v37 }
 0xbf5   :  { %608 = vrot.lane.b32.xlu1 %v606_v39, %s2923_s20 }
 0xc67   :  { %v609_v44 = vpop.permute.xlu1 %608 }
 0xc68   :  { %v611_v46 = vadd.f32 %v609_v44, %v601_v43 }
 0xc6a   :  { %2827 = vtanh.f32 %v611_v46 }
 0xc74   :  { %v2828_v32 = vpop.eup %2827 }
 0xc75   :  { %614 = vrot.lane.b32.xlu0 %v2828_v32, %s2919_s0 }
 0xce7   :  { %v615_v47 = vpop.permute.xlu0 %614 }
 0xce8   :  { %v3176_v48 = vmul.f32 %v2826_v36, %v615_v47 }
 0xcea   :  { %622 = vrot.lane.b32.xlu0 %v3176_v48, %s2919_s0  ;;  %619 = vrot.lane.b32.xlu1 %v3176_v48, %s2923_s20 }
 0xd5c   :  { %v623_v49 = vpop.permute.xlu0 %622  ;;  %v3182_v50 = vpop.permute.xlu1 %619 }
 0xd5d   :  { %v625_v51 = vsel %vm173_vm6, %v3182_v50, %v623_v49 }
 0xd5e   :  { %v626_v52 = vsel %vm3073_vm8, %v625_v51, 0.0 }
 0xd5f   :  { %2387 = vmatmul.mubr.msk.f32.vlgmr.msra.gmra.mrb[4].mxu1 %vm182_vm9, %v626_v52 }
 0xd60   :  { %2645 = vmatpush3.bf16.msra.mxu1 %v3018_v58  ;;  %2424 = vmatprep.mubr.msk.f32.mxu1 %vm2922_vm2, %v2918_v3 }
 0xd61   :  { %2646 = vmatprep.subr.bf16.mxu1 %v2920_v53 }
 0xd64   :  { %2648 = vmatpush3.bf16.msra.mxu1 %v3025_v60 }
 0xd65   :  { %2649 = vmatprep.subr.bf16.mxu1 %v2920_v53 }
 0xd68   :  { %2651 = vmatpush3.bf16.msra.mxu1 %v3037_v63 }
 0xd69   :  { %2652 = vmatprep.subr.bf16.mxu1 %v2920_v53 }
 0xd6c   :  { %2654 = vmatpush3.bf16.msra.mxu1 %v3052_v2 }
 0xd6d   :  { %2671 = vmatprep.subr.bf16.mxu1 %v2920_v53 }
 0xe32   :  { %v702_v54 = vpop.f32.mrb[4].mxu1 }
 0xe33   :  { %v706_v58 = vadd.f32 %v702_v54, %v2991_v40  ;;  %v2388_v38 = vpop.f32.mrb[5].mxu1 }
 0xe35   :  { %2829 = vtanh.f32 %v706_v58  ;;  %v2140_v57 = vmul.f32 -1.442695, %v706_v58 }
 0xe37   :  { %2831 = vpow2.f32 %v2140_v57 }
 0xe3f   :  { %v2830_v55 = vpop.eup %2829 }
 0xe40   :  { %716 = vrot.lane.b32.xlu1 %v2830_v55, %s2919_s0  ;;  %v974_v55 = vrot.slane %v3150_v21, 2  ;;  %v1023_v21 = vld [vmem:[%s3601_s1 + $0x20] sm:$0xff] }
 0xe41   :  { %v2832_v60 = vpop.eup %2831 }
 0xe42   :  { %v710_v61 = vadd.f32 1.0, %v2832_v60 }
 0xe44   :  { %2833 = vrcp.f32 %v710_v61 }
 0xe4e   :  { %v2834_v63 = vpop.eup %2833 }
 0xe4f   :  { %v714_v2 = vmul.f32 %v2834_v63, %v611_v46 }
 0xeb2   :  { %v717_v62 = vpop.permute.xlu1 %716 }
 0xeb3   :  { %v719_v0 = vmul.f32 %v2834_v63, %v717_v62  ;;  %v1024_v62 = vld [vmem:[%s3601_s1 + $0x28] sm:$0xff] }
 0xeb5   :  { %721 = vrot.lane.b32.xlu0 %v719_v0, %s2923_s20 }
 0xf27   :  { %v722_v1 = vpop.permute.xlu0 %721 }
 0xf28   :  { %v724_v4 = vadd.f32 %v722_v1, %v714_v2  ;;  %v1025_v2 = vld [vmem:[%s3601_s1 + $0x30] sm:$0xff]  ;;  %v1028_v1 = vld [vmem:[%s3601_s1 + $0x48] sm:$0xff] }
 0xf2a   :  { %2835 = vtanh.f32 %v724_v4 }
 0xf34   :  { %v2836_v40 = vpop.eup %2835 }
 0xf35   :  { %727 = vrot.lane.b32.xlu1 %v2836_v40, %s2919_s0 }
 0xfa7   :  { %v728_v6 = vpop.permute.xlu1 %727 }
 0xfa8   :  { %v3203_v11 = vmul.f32 %v2834_v63, %v728_v6  ;;  %v2657_v6 = vpack.c.bf16 %v1025_v2, %v1023_v21  ;;  %v1045_v21 = vsub.s32 5, %v2973_v10 }
 0xfaa   :  { %735 = vrot.lane.b32.xlu1 %v3203_v11, %s2919_s0  ;;  %732 = vrot.lane.b32.xlu0 %v3203_v11, %s2923_s20  ;;  %v964_v40 = vrot.slane %v3203_v11, 2  ;;  %v1046_v2 = vrot.slane %v2979_v12, %v1045_v21 }
0x101c   :  { %v736_v13 = vpop.permute.xlu1 %735  ;;  %v3209_v9 = vpop.permute.xlu0 %732 }
0x101d   :  { %v738_v14 = vsel %vm173_vm6, %v3209_v9, %v736_v13 }
0x101e   :  { %v739_v15 = vsel %vm3073_vm8, %v738_v14, 0.0  ;;  %v1027_v14 = vld [vmem:[%s3601_s1 + $0x40] sm:$0xff] }
0x101f   :  { %2406 = vmatmul.mubr.msk.f32.vlgmr.msra.gmra.mrb[8].mxu0 %vm182_vm9, %v739_v15  ;;  %v1029_v15 = vld [vmem:[%s3601_s1 + $0x50] sm:$0xff] }
0x1020   :  { %1127 = vmatprep.mubr.f32.mxu0 %v2918_v3  ;;  %v2661_v11 = vpack.c.bf16 %v1029_v15, %v1027_v14 }
0x10f2   :  { %v812_v16 = vpop.f32.mrb[8].mxu0 }
0x10f3   :  { %v816_v17 = vadd.f32 %v812_v16, %v2994_v41  ;;  %v2407_v18 = vpop.f32.mrb[9].mxu0  ;;  %v1032_v16 = vld [vmem:[%s3601_s1 + $0x68] sm:$0xff] }
0x10f5   :  { %2837 = vtanh.f32 %v816_v17  ;;  %v2142_v45 = vmul.f32 -1.442695, %v816_v17  ;;  %v1034_v17 = vld [vmem:[%s3601_s1 + $0x78] sm:$0xff] }
0x10f6   :  { %v2663_v18 = vpack.c.bf16 %v1034_v17, %v1032_v16 }
0x10f7   :  { %2839 = vpow2.f32 %v2142_v45  ;;  %v1033_v45 = vld [vmem:[%s3601_s1 + $0x70] sm:$0xff] }
0x10ff   :  { %v2838_v19 = vpop.eup %2837 }
0x1100   :  { %826 = vrot.lane.b32.xlu0 %v2838_v19, %s2919_s0  ;;  %v1031_v19 = vld [vmem:[%s3601_s1 + $0x60] sm:$0xff] }
0x1101   :  { %v2840_v20 = vpop.eup %2839 }
0x1102   :  { %v820_v22 = vadd.f32 1.0, %v2840_v20  ;;  %v969_v20 = vrot.slane %v3176_v48, 2  ;;  %v1035_v48 = vld [vmem:[%s3601_s1 + $0x80] sm:$0xff] }
0x1104   :  { %2841 = vrcp.f32 %v820_v22  ;;  %v2665_v22 = vpack.c.bf16 %v1033_v45, %v1031_v19 }
0x110e   :  { %v2842_v24 = vpop.eup %2841 }
0x110f   :  { %v824_v27 = vmul.f32 %v2842_v24, %v724_v4  ;;  %v1030_v4 = vld [vmem:[%s3601_s1 + $0x58] sm:$0xff] }
0x1110   :  { %v2659_v13 = vpack.c.bf16 %v1030_v4, %v1028_v1 }
0x1172   :  { %v827_v25 = vpop.permute.xlu0 %826 }
0x1173   :  { %v829_v26 = vmul.f32 %v2842_v24, %v827_v25  ;;  %v1036_v25 = vld [vmem:[%s3601_s1 + $0x88] sm:$0xff] }
0x1175   :  { %831 = vrot.lane.b32.xlu1 %v829_v26, %s2923_s20  ;;  %v1038_v26 = vld [vmem:[%s3601_s1 + $0x98] sm:$0xff] }
0x11e7   :  { %v832_v28 = vpop.permute.xlu1 %831 }
0x11e8   :  { %v834_v29 = vadd.f32 %v832_v28, %v824_v27  ;;  %v2667_v27 = vpack.c.bf16 %v1038_v26, %v1036_v25 }
0x11ea   :  { %2843 = vtanh.f32 %v834_v29 }
0x11f4   :  { %v2844_v41 = vpop.eup %2843 }
0x11f5   :  { %837 = vrot.lane.b32.xlu0 %v2844_v41, %s2919_s0 }
0x1267   :  { %v838_v31 = vpop.permute.xlu0 %837 }
0x1268   :  { %v840_v34 = vmul.f32 %v2842_v24, %v838_v31  ;;  %v984_v24 = vrot.slane %v3096_v30, 2  ;;  %v1037_v30 = vld [vmem:[%s3601_s1 + $0x90] sm:$0xff] }
0x1269   :  { %v2669_v28 = vpack.c.bf16 %v1037_v30, %v1035_v48 }
0x126a   :  { %845 = vrot.lane.b32.xlu0 %v840_v34, %s2919_s0  ;;  %842 = vrot.lane.b32.xlu1 %v840_v34, %s2923_s20  ;;  %v959_v38 = vrot.slane %v840_v34, 2  ;;  %v992_v34 = vrot.slane %v3062_v5, 2 }
0x12dc   :  { %v846_v35 = vpop.permute.xlu0 %845  ;;  %v3223_v36 = vpop.permute.xlu1 %842 }
0x12dd   :  { %v848_v37 = vsel %vm173_vm6, %v3223_v36, %v846_v35 }
0x12de   :  { %v849_v39 = vsel %vm3073_vm8, %v848_v37, 0.0 }
0x12df   :  { %2425 = vmatmul.mubr.msk.f32.vlgmr.msra.gmra.mrb[6].mxu1 %vm182_vm9, %v849_v39 }
0x12e0   :  { %2443 = vmatprep.mubr.msk.f32.mxu1 %vm2922_vm2, %v2918_v3 }
0x13b2   :  { %v924_v43 = vpop.f32.mrb[6].mxu1 }
0x13b3   :  { %v928_v44 = vadd.f32 %v924_v43, %v2997_v42  ;;  %v2426_v46 = vpop.f32.mrb[7].mxu1  ;;  %v979_v42 = vrot.slane %v3123_v56, 2  ;;  %v1026_v56 = vld [vmem:[%s3601_s1 + $0x38] sm:$0xff] }
0x13b4   :  { %v2655_v0 = vpack.c.bf16 %v1026_v56, %v1024_v62  ;;  %v1041_v56 = vsub.s32 1, %v2973_v10 }
0x13b5   :  { %2845 = vtanh.f32 %v928_v44  ;;  %v2144_v47 = vmul.f32 -1.442695, %v928_v44 }
0x13b6   :  { %2656 = vmatprep.subr.bf16.mxu0 %v2655_v0  ;;  %v1042_v0 = vrot.slane %v2979_v12, %v1041_v56  ;;  %v1056_v4 = vrot.slane %v1046_v2, %v1041_v56 }
0x13b7   :  { %2847 = vpow2.f32 %v2144_v47  ;;  %2658 = vmatpush1.bf16.msra.mxu0 %v2657_v6 }
0x13b8   :  { %2660 = vmatprep.subr.bf16.mxu0 %v2659_v13  ;;  %v1052_v1 = vrot.slane %v1042_v0, %v1041_v56 }
0x13bb   :  { %2662 = vmatpush1.bf16.msra.mxu0 %v2661_v11 }
0x13bc   :  { %2664 = vmatprep.subr.bf16.mxu0 %v2663_v18 }
0x13bf   :  { %v2846_v32 = vpop.eup %2845  ;;  %2666 = vmatpush1.bf16.msra.mxu0 %v2665_v22 }
0x13c0   :  { %938 = vrot.lane.b32.xlu1 %v2846_v32, %s2919_s0  ;;  %2668 = vmatprep.subr.bf16.mxu0 %v2667_v27 }
0x13c1   :  { %v2848_v49 = vpop.eup %2847 }
0x13c2   :  { %v932_v51 = vadd.f32 1.0, %v2848_v49 }
0x13c3   :  { %2670 = vmatpush1.bf16.msra.mxu0 %v2669_v28 }
0x13c4   :  { %2849 = vrcp.f32 %v932_v51  ;;  %2683 = vmatprep.subr.bf16.mxu0 %v2920_v53 }
0x13ce   :  { %v2850_v52 = vpop.eup %2849 }
0x13cf   :  { %v936_v57 = vmul.f32 %v2850_v52, %v834_v29 }
0x1432   :  { %v939_v54 = vpop.permute.xlu1 %938 }
0x1433   :  { %v941_v58 = vmul.f32 %v2850_v52, %v939_v54 }
0x1435   :  { %943 = vrot.lane.b32.xlu0 %v941_v58, %s2923_s20 }
0x1439   :  { %960 = vrot.lane.b32.xlu0 %v959_v38, %s2919_s0 }
0x143d   :  { %980 = vrot.lane.b32.xlu0 %v979_v42, %s2919_s0 }
0x1441   :  { %975 = vrot.lane.b32.xlu0 %v974_v55, %s2919_s0 }
0x14a7   :  { %v944_v60 = vpop.permute.xlu0 %943 }
0x14a8   :  { %v946_v61 = vadd.f32 %v944_v60, %v936_v57 }
0x14aa   :  { %2851 = vtanh.f32 %v946_v61 }
0x14ab   :  { %v961_v35 = vpop.permute.xlu0 %960 }
0x14ac   :  { %v963_v46 = vsel %vm173_vm6, %v3102_v33, %v961_v35 }
0x14ad   :  { %v998_v51 = vrot.slane %v963_v46, 6 }
0x14af   :  { %v981_v39 = vpop.permute.xlu0 %980 }
0x14b0   :  { %v983_v54 = vsel %vm173_vm6, %v3209_v9, %v981_v39 }
0x14b3   :  { %v976_v44 = vpop.permute.xlu0 %975 }
0x14b4   :  { %v2852_v63 = vpop.eup %2851 }
0x14b5   :  { %949 = vrot.lane.b32.xlu1 %v2852_v63, %s2919_s0 }
0x14b9   :  { %965 = vrot.lane.b32.xlu1 %v964_v40, %s2919_s0 }
0x14bd   :  { %970 = vrot.lane.b32.xlu1 %v969_v20, %s2919_s0 }
0x14c1   :  { %985 = vrot.lane.b32.xlu1 %v984_v24, %s2919_s0 }
0x1527   :  { %v950_v29 = vpop.permute.xlu1 %949 }
0x1528   :  { %v952_v41 = vmul.f32 %v2850_v52, %v950_v29 }
0x152a   :  { %v954_v31 = vrot.slane %v952_v41, 2  ;;  %989 = vrot.lane.b32.xlu1 %v952_v41, %s2923_s20 }
0x152b   :  { %v966_v37 = vpop.permute.xlu1 %965 }
0x152c   :  { %955 = vrot.lane.b32.xlu0 %v954_v31, %s2919_s0  ;;  %v968_v47 = vsel %vm173_vm6, %v3129_v59, %v966_v37 }
0x152d   :  { %v1001_v58 = vrot.slane %v968_v47, 4 }
0x152f   :  { %v971_v43 = vpop.permute.xlu1 %970 }
0x1530   :  { %993 = vrot.lane.b32.xlu0 %v992_v34, %s2919_s0  ;;  %v973_v49 = vsel %vm173_vm6, %v3156_v23, %v971_v43  ;;  %v978_v23 = vsel %vm173_vm6, %v3182_v50, %v976_v44 }
0x1531   :  { %v1004_v33 = vrot.slane %v973_v49, 2 }
0x1533   :  { %v986_v32 = vpop.permute.xlu1 %985 }
0x1534   :  { %v988_v5 = vsel %vm173_vm6, %v3223_v36, %v986_v32  ;;  %v1007_v36 = vrot.slane %v983_v54, 6  ;;  %v1142_v54 = vld [vmem:[%s3604_s2 + $0x50] sm:$0xff] }
0x1535   :  { %v1010_v42 = vrot.slane %v988_v5, 4  ;;  %v1140_v5 = vld [vmem:[%s3604_s2 + $0x40] sm:$0xff] }
0x159c   :  { %v990_v57 = vpop.permute.xlu1 %989 }
0x159e   :  { %v956_v52 = vpop.permute.xlu0 %955 }
0x159f   :  { %v958_v38 = vsel %vm173_vm6, %v3071_v7, %v956_v52  ;;  %v1020_v7 = vsel %vm146_vm1, %v978_v23, %v1007_v36  ;;  %v1141_v52 = vld [vmem:[%s3604_s2 + $0x48] sm:$0xff]  ;;  %v1146_v36 = vld [vmem:[%s3604_s2 + $0x70] sm:$0xff] }
0x15a0   :  { %v1015_v59 = vsel %vm146_vm1, %v958_v38, %v998_v51  ;;  %v1021_v62 = vsel %vm1016_vm11, %v1020_v7, %v1010_v42  ;;  %v1143_v38 = vld [vmem:[%s3604_s2 + $0x58] sm:$0xff]  ;;  %v1145_v23 = vld [vmem:[%s3604_s2 + $0x68] sm:$0xff] }
0x15a1   :  { %v1017_v55 = vsel %vm1016_vm11, %v1015_v59, %v1001_v58  ;;  %v3362_v58 = vpack.c.bf16 %v1141_v52, %v1140_v5  ;;  %v1144_v59 = vld [vmem:[%s3604_s2 + $0x60] sm:$0xff] }
0x15a2   :  { %v994_v60 = vpop.permute.xlu0 %993  ;;  %v1019_v9 = vsel %vm1018_vm10, %v1017_v55, %v1004_v33  ;;  %v3368_v33 = vpack.c.bf16 %v1143_v38, %v1142_v54  ;;  %v3381_v55 = vpack.c.bf16 %v1145_v23, %v1144_v59 }
0x15a3   :  { %v996_v61 = vsel %vm173_vm6, %v990_v57, %v994_v60  ;;  %2145 = vmatmul.mubr.msk.f32.vlgmr.msra.gmra.mrb[10].mxu0 %vm182_vm9, %v1019_v9  ;;  %2673 = vmatpush3.bf16.msra.mxu1 %v3362_v58  ;;  %v1147_v57 = vld [vmem:[%s3604_s2 + $0x78] sm:$0xff] }
0x15a4   :  { %v1013_v63 = vrot.slane %v996_v61, 2  ;;  %1133 = vmatprep.mubr.f32.mxu0 %v2918_v3  ;;  %2685 = vmatpush3.bf16.msra.mxu0 %v3362_v58  ;;  %v3393_v60 = vpack.c.bf16 %v1147_v57, %v1146_v36 }
0x15a5   :  { %2674 = vmatprep.subr.bf16.mxu1 %v2920_v53  ;;  %2686 = vmatprep.subr.bf16.mxu0 %v2920_v53 }
0x15a6   :  { %v1022_v50 = vsel %vm1018_vm10, %v1021_v62, %v1013_v63 }
0x15a7   :  { %2146 = vmatmul.mubr.msk.f32.gmra.mrb[12].mxu0 %vm182_vm9, %v1022_v50  ;;  %2676 = vmatpush3.bf16.msra.mxu1 %v3368_v33 }
0x15a8   :  { %2462 = vmatprep.mubr.msk.f32.mxu0 %vm2922_vm2, %v2918_v3  ;;  %2677 = vmatprep.subr.bf16.mxu1 %v2920_v53 }
0x15a9   :  { %2688 = vmatpush3.bf16.msra.mxu0 %v3368_v33 }
0x15aa   :  { %2689 = vmatprep.subr.bf16.mxu0 %v2920_v53 }
0x15ab   :  { %2679 = vmatpush3.bf16.msra.mxu1 %v3381_v55 }
0x15ac   :  { %2680 = vmatprep.subr.bf16.mxu1 %v2920_v53 }
0x15ad   :  { %2691 = vmatpush3.bf16.msra.mxu0 %v3381_v55 }
0x15ae   :  { %2692 = vmatprep.subr.bf16.mxu0 %v2920_v53 }
0x15af   :  { %2682 = vmatpush3.bf16.msra.mxu1 %v3393_v60 }
0x15b0   :  { %2695 = vmatprep.subr.bf16.mxu1 %v2920_v53 }
0x15b1   :  { %2694 = vmatpush3.bf16.msra.mxu0 %v3393_v60 }
0x15b2   :  { %2707 = vmatprep.subr.bf16.mxu0 %v2920_v53 }
0x1676   :  { %v1129_v40 = vpop.f32.mrb[10].mxu0 }
0x1677   :  { %v1130_v6 = vadd.f32 %v1129_v40, %v1052_v1  ;;  %v1131_v13 = vpop.f32.mrb[11].mxu0 }
0x1678   :  { %v1132_v14 = vadd.f32 %v1131_v13, %v1056_v4 }
0x1679   :  { %v1180_v18 = vrot.slane %v1130_v6, 2  ;;  %v1296_v19 = vrot.slane %v1130_v6, 4  ;;  %v1406_v20 = vrot.slane %v1130_v6, 6 }
0x167a   :  { %v1135_v15 = vpop.f32.mrb[12].mxu0  ;;  %v1519_v16 = vrot.slane %v1132_v14, 4  ;;  %v1632_v22 = vrot.slane %v1132_v14, 2  ;;  %v1854_v24 = vrot.slane %v1132_v14, 6 }
0x167b   :  { %v1136_v17 = vadd.f32 %v1135_v15, %v1052_v1  ;;  %v1137_v11 = vpop.f32.mrb[13].mxu0 }
0x167c   :  { %v1138_v45 = vadd.f32 %v1137_v11, %v1056_v4 }
0x167d   :  { %v3331_v25 = vsel %vm146_vm1, %v1136_v17, %v1519_v16  ;;  %v1630_v12 = vrot.slane %v1136_v17, 2  ;;  %v1742_v26 = vrot.slane %v1136_v17, 4  ;;  %v1852_v27 = vrot.slane %v1136_v17, 6 }
0x167e   :  { %v1149_v48 = vrot.slane %v1138_v45, 4  ;;  %v1182_v30 = vrot.slane %v1138_v45, 2  ;;  %v3334_v28 = vsel %vm146_vm1, %v1296_v19, %v1138_v45  ;;  %v1408_v29 = vrot.slane %v1138_v45, 6 }
0x167f   :  { %v3337_v41 = vsel %vm146_vm1, %v1630_v12, %v1632_v22  ;;  %v3340_v31 = vsel %vm146_vm1, %v1742_v26, %v1132_v14  ;;  %v3343_v34 = vsel %vm146_vm1, %v1852_v27, %v1854_v24 }
0x1680   :  { %v1151_v35 = vsel %vm146_vm1, %v1130_v6, %v1149_v48  ;;  %v3347_v37 = vsel %vm146_vm1, %v1180_v18, %v1182_v30  ;;  %v3350_v39 = vsel %vm146_vm1, %v1406_v20, %v1408_v29 }
0x1681   :  { %2853 = vtanh.f32 %v1151_v35  ;;  %v2147_v44 = vmul.f32 -1.442695, %v1151_v35 }
0x1683   :  { %2855 = vpow2.f32 %v2147_v44 }
0x168b   :  { %v2854_v43 = vpop.eup %2853 }
0x168c   :  { %1160 = vrot.lane.b32.xlu1 %v2854_v43, %s2919_s0 }
0x168d   :  { %v2856_v46 = vpop.eup %2855 }
0x168e   :  { %v1155_v32 = vadd.f32 1.0, %v2856_v46 }
0x1690   :  { %2857 = vrcp.f32 %v1155_v32 }
0x169a   :  { %v2858_v47 = vpop.eup %2857 }
0x16fe   :  { %v1161_v49 = vpop.permute.xlu1 %1160 }
0x16ff   :  { %v1163_v51 = vmul.f32 %v2858_v47, %v1161_v49 }
0x1701   :  { %2859 = vtanh.f32 %v1163_v51 }
0x170b   :  { %v2860_v42 = vpop.eup %2859 }
0x170c   :  { %1166 = vrot.lane.b32.xlu0 %v2860_v42, %s2921_s11 }
0x177e   :  { %v1167_v9 = vpop.permute.xlu0 %1166 }
0x177f   :  { %v3402_v61 = vmul.f32 %v2858_v47, %v1167_v9 }
0x1781   :  { %1174 = vrot.lane.b32.xlu0 %v3402_v61, %s2919_s0  ;;  %1171 = vrot.lane.b32.xlu1 %v3402_v61, %s2923_s20 }
0x1785   :  { %1267 = vrot.lane.b32.xlu0 %v1163_v51, %s2923_s20 }
0x17f3   :  { %v1175_v7 = vpop.permute.xlu0 %1174  ;;  %v3409_v63 = vpop.permute.xlu1 %1171 }
0x17f4   :  { %v1177_v62 = vsel %vm173_vm6, %v3409_v63, %v1175_v7 }
0x17f5   :  { %v1178_v50 = vsel %vm3073_vm8, %v1177_v62, 0.0 }
0x17f6   :  { %2444 = vmatmul.mubr.msk.f32.vlgmr.msra.gmra.mrb[8].mxu1 %vm182_vm9, %v1178_v50 }
0x17f7   :  { %2697 = vmatpush3.bf16.msra.mxu1 %v3362_v58  ;;  %2481 = vmatprep.mubr.msk.f32.mxu1 %vm2922_vm2, %v2918_v3  ;;  %v1268_v15 = vpop.permute.xlu0 %1267 }
0x17f8   :  { %2698 = vmatprep.subr.bf16.mxu1 %v2920_v53 }
0x17fb   :  { %2700 = vmatpush3.bf16.msra.mxu1 %v3368_v33 }
0x17fc   :  { %2701 = vmatprep.subr.bf16.mxu1 %v2920_v53 }
0x17ff   :  { %2703 = vmatpush3.bf16.msra.mxu1 %v3381_v55 }
0x1800   :  { %2704 = vmatprep.subr.bf16.mxu1 %v2920_v53 }
0x1803   :  { %2706 = vmatpush3.bf16.msra.mxu1 %v3393_v60 }
0x1804   :  { %2719 = vmatprep.subr.bf16.mxu1 %v2920_v53 }
0x18c9   :  { %v1254_v56 = vpop.f32.mrb[8].mxu1 }
0x18ca   :  { %v1258_v21 = vadd.f32 %v1254_v56, %v3347_v37  ;;  %v2445_v0 = vpop.f32.mrb[9].mxu1 }
0x18cc   :  { %2861 = vtanh.f32 %v1258_v21  ;;  %v2149_v1 = vmul.f32 -1.442695, %v1258_v21 }
0x18ce   :  { %2863 = vpow2.f32 %v2149_v1 }
0x18d6   :  { %v2862_v2 = vpop.eup %2861 }
0x18d7   :  { %1272 = vrot.lane.b32.xlu1 %v2862_v2, %s2919_s0 }
0x18d8   :  { %v2864_v4 = vpop.eup %2863 }
0x18d9   :  { %v1262_v40 = vadd.f32 1.0, %v2864_v4 }
0x18db   :  { %2865 = vrcp.f32 %v1262_v40 }
0x18e5   :  { %v2866_v6 = vpop.eup %2865 }
0x18e6   :  { %v1270_v16 = vmul.f32 %v2866_v6, %v1268_v15 }
0x1949   :  { %v1273_v13 = vpop.permute.xlu1 %1272 }
0x194a   :  { %v1275_v14 = vmul.f32 %v2866_v6, %v1273_v13 }
0x194c   :  { %1277 = vrot.lane.b32.xlu1 %v1275_v14, %s2923_s20 }
0x19be   :  { %v1278_v17 = vpop.permute.xlu1 %1277 }
0x19bf   :  { %v1280_v11 = vadd.f32 %v1278_v17, %v1270_v16 }
0x19c1   :  { %2867 = vtanh.f32 %v1280_v11 }
0x19cb   :  { %v2868_v18 = vpop.eup %2867 }
0x19cc   :  { %1283 = vrot.lane.b32.xlu0 %v2868_v18, %s2919_s0 }
0x1a3e   :  { %v1284_v19 = vpop.permute.xlu0 %1283 }
0x1a3f   :  { %v3430_v45 = vmul.f32 %v2866_v6, %v1284_v19  ;;  %v1994_v6 = vrot.slane %v3402_v61, 2 }
0x1a41   :  { %1291 = vrot.lane.b32.xlu0 %v3430_v45, %s2919_s0  ;;  %1288 = vrot.lane.b32.xlu1 %v3430_v45, %s2923_s20 }
0x1ab3   :  { %v1292_v20 = vpop.permute.xlu0 %1291  ;;  %v3436_v22 = vpop.permute.xlu1 %1288 }
0x1ab4   :  { %v1294_v24 = vsel %vm173_vm6, %v3436_v22, %v1292_v20 }
0x1ab5   :  { %v1295_v12 = vsel %vm3073_vm8, %v1294_v24, 0.0 }
0x1ab6   :  { %2463 = vmatmul.mubr.msk.f32.vlgmr.msra.gmra.mrb[14].mxu0 %vm182_vm9, %v1295_v12 }
0x1ab7   :  { %2709 = vmatpush3.bf16.msra.mxu0 %v3362_v58  ;;  %2500 = vmatprep.mubr.msk.f32.mxu0 %vm2922_vm2, %v2918_v3 }
0x1ab8   :  { %2710 = vmatprep.subr.bf16.mxu0 %v2920_v53 }
0x1abb   :  { %2712 = vmatpush3.bf16.msra.mxu0 %v3368_v33 }
0x1abc   :  { %2713 = vmatprep.subr.bf16.mxu0 %v2920_v53 }
0x1abf   :  { %2715 = vmatpush3.bf16.msra.mxu0 %v3381_v55 }
0x1ac0   :  { %2716 = vmatprep.subr.bf16.mxu0 %v2920_v53 }
0x1ac3   :  { %2718 = vmatpush3.bf16.msra.mxu0 %v3393_v60 }
0x1ac4   :  { %2731 = vmatprep.subr.bf16.mxu0 %v2920_v53 }
0x1b89   :  { %v1368_v26 = vpop.f32.mrb[14].mxu0 }
0x1b8a   :  { %v1372_v27 = vadd.f32 %v1368_v26, %v3334_v28  ;;  %v2464_v48 = vpop.f32.mrb[15].mxu0 }
0x1b8c   :  { %2869 = vtanh.f32 %v1372_v27  ;;  %v2151_v29 = vmul.f32 -1.442695, %v1372_v27 }
0x1b8e   :  { %2871 = vpow2.f32 %v2151_v29 }
0x1b96   :  { %v2870_v30 = vpop.eup %2869 }
0x1b97   :  { %1382 = vrot.lane.b32.xlu1 %v2870_v30, %s2919_s0 }
0x1b98   :  { %v2872_v35 = vpop.eup %2871 }
0x1b99   :  { %v1376_v37 = vadd.f32 1.0, %v2872_v35 }
0x1b9b   :  { %2873 = vrcp.f32 %v1376_v37 }
0x1ba5   :  { %v2874_v43 = vpop.eup %2873 }
0x1ba6   :  { %v1380_v32 = vmul.f32 %v2874_v43, %v1280_v11 }
0x1c09   :  { %v1383_v44 = vpop.permute.xlu1 %1382 }
0x1c0a   :  { %v1385_v46 = vmul.f32 %v2874_v43, %v1383_v44 }
0x1c0c   :  { %1387 = vrot.lane.b32.xlu0 %v1385_v46, %s2923_s20 }
0x1c7e   :  { %v1388_v47 = vpop.permute.xlu0 %1387 }
0x1c7f   :  { %v1390_v49 = vadd.f32 %v1388_v47, %v1380_v32 }
0x1c81   :  { %2875 = vtanh.f32 %v1390_v49 }
0x1c8b   :  { %v2876_v28 = vpop.eup %2875 }
0x1c8c   :  { %1393 = vrot.lane.b32.xlu1 %v2876_v28, %s2919_s0 }
0x1cfe   :  { %v1394_v51 = vpop.permute.xlu1 %1393 }
0x1cff   :  { %v3457_v5 = vmul.f32 %v2874_v43, %v1394_v51 }
0x1d01   :  { %1401 = vrot.lane.b32.xlu1 %v3457_v5, %s2919_s0  ;;  %1398 = vrot.lane.b32.xlu0 %v3457_v5, %s2923_s20 }
0x1d73   :  { %v1402_v52 = vpop.permute.xlu1 %1401  ;;  %v3463_v54 = vpop.permute.xlu0 %1398 }
0x1d74   :  { %v1404_v38 = vsel %vm173_vm6, %v3463_v54, %v1402_v52 }
0x1d75   :  { %v1405_v59 = vsel %vm3073_vm8, %v1404_v38, 0.0 }
0x1d76   :  { %2482 = vmatmul.mubr.msk.f32.vlgmr.msra.gmra.mrb[10].mxu1 %vm182_vm9, %v1405_v59 }
0x1d77   :  { %2721 = vmatpush3.bf16.msra.mxu1 %v3362_v58  ;;  %2519 = vmatprep.mubr.msk.f32.mxu1 %vm2922_vm2, %v2918_v3 }
0x1d78   :  { %2722 = vmatprep.subr.bf16.mxu1 %v2920_v53 }
0x1d7b   :  { %2724 = vmatpush3.bf16.msra.mxu1 %v3368_v33 }
0x1d7c   :  { %2725 = vmatprep.subr.bf16.mxu1 %v2920_v53 }
0x1d7f   :  { %2727 = vmatpush3.bf16.msra.mxu1 %v3381_v55 }
0x1d80   :  { %2728 = vmatprep.subr.bf16.mxu1 %v2920_v53 }
0x1d83   :  { %2730 = vmatpush3.bf16.msra.mxu1 %v3393_v60 }
0x1d84   :  { %2743 = vmatprep.subr.bf16.mxu1 %v2920_v53 }
0x1e49   :  { %v1480_v23 = vpop.f32.mrb[10].mxu1 }
0x1e4a   :  { %v1484_v42 = vadd.f32 %v1480_v23, %v3350_v39  ;;  %v2483_v36 = vpop.f32.mrb[11].mxu1 }
0x1e4c   :  { %2877 = vtanh.f32 %v1484_v42  ;;  %v2153_v9 = vmul.f32 -1.442695, %v1484_v42 }
0x1e4e   :  { %2879 = vpow2.f32 %v2153_v9 }
0x1e56   :  { %v2878_v57 = vpop.eup %2877 }
0x1e57   :  { %1494 = vrot.lane.b32.xlu0 %v2878_v57, %s2919_s0 }
0x1e58   :  { %v2880_v7 = vpop.eup %2879 }
0x1e59   :  { %v1488_v62 = vadd.f32 1.0, %v2880_v7  ;;  %v1986_v7 = vrot.slane %v3430_v45, 2 }
0x1e5b   :  { %2881 = vrcp.f32 %v1488_v62 }
0x1e65   :  { %v2882_v50 = vpop.eup %2881 }
0x1e66   :  { %v1492_v0 = vmul.f32 %v2882_v50, %v1390_v49 }
0x1ec9   :  { %v1495_v56 = vpop.permute.xlu0 %1494 }
0x1eca   :  { %v1497_v21 = vmul.f32 %v2882_v50, %v1495_v56 }
0x1ecc   :  { %1499 = vrot.lane.b32.xlu1 %v1497_v21, %s2923_s20 }
0x1f3e   :  { %v1500_v2 = vpop.permute.xlu1 %1499 }
0x1f3f   :  { %v1502_v1 = vadd.f32 %v1500_v2, %v1492_v0 }
0x1f41   :  { %2883 = vtanh.f32 %v1502_v1 }
0x1f4b   :  { %v2884_v39 = vpop.eup %2883 }
0x1f4c   :  { %1505 = vrot.lane.b32.xlu0 %v2884_v39, %s2919_s0 }
0x1fbe   :  { %v1506_v4 = vpop.permute.xlu0 %1505 }
0x1fbf   :  { %v1508_v40 = vmul.f32 %v2882_v50, %v1506_v4 }
0x1fc1   :  { %v1976_v13 = vrot.slane %v1508_v40, 2  ;;  %1513 = vrot.lane.b32.xlu0 %v1508_v40, %s2919_s0  ;;  %1510 = vrot.lane.b32.xlu1 %v1508_v40, %s2923_s20 }
0x1fc3   :  { %v3487_v14 = vpack.i.bf16 %v1994_v6, %v1976_v13 }
0x2033   :  { %v1514_v15 = vpop.permute.xlu0 %1513  ;;  %v3489_v16 = vpop.permute.xlu1 %1510 }
0x2034   :  { %v1516_v17 = vsel %vm173_vm6, %v3489_v16, %v1514_v15 }
0x2035   :  { %v1517_v11 = vsel %vm3073_vm8, %v1516_v17, 0.0 }
0x2036   :  { %2501 = vmatmul.mubr.msk.f32.vlgmr.msra.gmra.mrb[16].mxu0 %vm182_vm9, %v1517_v11 }
0x2037   :  { %2733 = vmatpush3.bf16.msra.mxu0 %v3362_v58  ;;  %2538 = vmatprep.mubr.msk.f32.mxu0 %vm2922_vm2, %v2918_v3 }
0x2038   :  { %2734 = vmatprep.subr.bf16.mxu0 %v2920_v53 }
0x203b   :  { %2736 = vmatpush3.bf16.msra.mxu0 %v3368_v33 }
0x203c   :  { %2737 = vmatprep.subr.bf16.mxu0 %v2920_v53 }
0x203f   :  { %2739 = vmatpush3.bf16.msra.mxu0 %v3381_v55 }
0x2040   :  { %2740 = vmatprep.subr.bf16.mxu0 %v2920_v53 }
0x2043   :  { %2742 = vmatpush3.bf16.msra.mxu0 %v3393_v60 }
0x2044   :  { %2755 = vmatprep.subr.bf16.mxu0 %v2920_v53 }
0x2109   :  { %v1591_v61 = vpop.f32.mrb[16].mxu0 }
0x210a   :  { %v1595_v18 = vadd.f32 %v1591_v61, %v3331_v25  ;;  %v2502_v19 = vpop.f32.mrb[17].mxu0 }
0x210c   :  { %2885 = vtanh.f32 %v1595_v18  ;;  %v2155_v24 = vmul.f32 -1.442695, %v1595_v18 }
0x210e   :  { %2887 = vpow2.f32 %v2155_v24  ;;  %v1981_v24 = vrot.slane %v3457_v5, 2 }
0x2116   :  { %v2886_v20 = vpop.eup %2885 }
0x2117   :  { %1605 = vrot.lane.b32.xlu1 %v2886_v20, %s2919_s0 }
0x2118   :  { %v2888_v12 = vpop.eup %2887 }
0x2119   :  { %v1599_v26 = vadd.f32 1.0, %v2888_v12 }
0x211b   :  { %2889 = vrcp.f32 %v1599_v26 }
0x2125   :  { %v2890_v27 = vpop.eup %2889 }
0x2126   :  { %v1603_v29 = vmul.f32 %v2890_v27, %v1502_v1 }
0x2189   :  { %v1606_v48 = vpop.permute.xlu1 %1605 }
0x218a   :  { %v1608_v30 = vmul.f32 %v2890_v27, %v1606_v48 }
0x218c   :  { %1610 = vrot.lane.b32.xlu0 %v1608_v30, %s2923_s20 }
0x21fe   :  { %v1611_v35 = vpop.permute.xlu0 %1610 }
0x21ff   :  { %v1613_v37 = vadd.f32 %v1611_v35, %v1603_v29 }
0x2201   :  { %2891 = vtanh.f32 %v1613_v37 }
0x220b   :  { %v2892_v25 = vpop.eup %2891 }
0x220c   :  { %1616 = vrot.lane.b32.xlu1 %v2892_v25, %s2919_s0 }
0x227e   :  { %v1617_v43 = vpop.permute.xlu1 %1616 }
0x227f   :  { %v3510_v44 = vmul.f32 %v2890_v27, %v1617_v43 }
0x2281   :  { %1624 = vrot.lane.b32.xlu1 %v3510_v44, %s2919_s0  ;;  %1621 = vrot.lane.b32.xlu0 %v3510_v44, %s2923_s20 }
0x22f3   :  { %v1625_v46 = vpop.permute.xlu1 %1624  ;;  %v3516_v32 = vpop.permute.xlu0 %1621 }
0x22f4   :  { %v1627_v47 = vsel %vm173_vm6, %v3516_v32, %v1625_v46 }
0x22f5   :  { %v1628_v49 = vsel %vm3073_vm8, %v1627_v47, 0.0 }
0x22f6   :  { %2520 = vmatmul.mubr.msk.f32.vlgmr.msra.gmra.mrb[12].mxu1 %vm182_vm9, %v1628_v49 }
0x22f7   :  { %2745 = vmatpush3.bf16.msra.mxu1 %v3362_v58  ;;  %2557 = vmatprep.mubr.msk.f32.mxu1 %vm2922_vm2, %v2918_v3 }
0x22f8   :  { %2746 = vmatprep.subr.bf16.mxu1 %v2920_v53 }
0x22fb   :  { %2748 = vmatpush3.bf16.msra.mxu1 %v3368_v33 }
0x22fc   :  { %2749 = vmatprep.subr.bf16.mxu1 %v2920_v53 }
0x22ff   :  { %2751 = vmatpush3.bf16.msra.mxu1 %v3381_v55 }
0x2300   :  { %2752 = vmatprep.subr.bf16.mxu1 %v2920_v53 }
0x2303   :  { %2754 = vmatpush3.bf16.msra.mxu1 %v3393_v60 }
0x23c9   :  { %v1704_v28 = vpop.f32.mrb[12].mxu1 }
0x23ca   :  { %v1708_v51 = vadd.f32 %v1704_v28, %v3337_v41  ;;  %v2521_v52 = vpop.f32.mrb[13].mxu1 }
0x23cc   :  { %2893 = vtanh.f32 %v1708_v51  ;;  %v2157_v38 = vmul.f32 -1.442695, %v1708_v51 }
0x23ce   :  { %2895 = vpow2.f32 %v2157_v38 }
0x23d6   :  { %v2894_v58 = vpop.eup %2893 }
0x23d7   :  { %1718 = vrot.lane.b32.xlu0 %v2894_v58, %s2919_s0 }
0x23d8   :  { %v2896_v59 = vpop.eup %2895 }
0x23d9   :  { %v1712_v33 = vadd.f32 1.0, %v2896_v59 }
0x23db   :  { %2897 = vrcp.f32 %v1712_v33  ;;  %v1971_v33 = vrot.slane %v3510_v44, 2 }
0x23e5   :  { %v2898_v23 = vpop.eup %2897 }
0x23e6   :  { %v1716_v53 = vmul.f32 %v2898_v23, %v1613_v37 }
0x2449   :  { %v1719_v42 = vpop.permute.xlu0 %1718 }
0x244a   :  { %v1721_v55 = vmul.f32 %v2898_v23, %v1719_v42 }
0x244c   :  { %1723 = vrot.lane.b32.xlu1 %v1721_v55, %s2923_s20  ;;  %v2925_v55 = vmov 64  }
0x244d   :  { %2788 = vset.pattern.permute.xlu0 %v2925_v55 }
0x24be   :  { %v1724_v60 = vpop.permute.xlu1 %1723 }
0x24bf   :  { %v1726_v36 = vadd.f32 %v1724_v60, %v1716_v53  ;;  %v2917_v53 = vld [vmem:[%s3603_s3] sm:$0x77] }
0x24c1   :  { %2899 = vtanh.f32 %v1726_v36 }
0x24cb   :  { %v2900_v41 = vpop.eup %2899 }
0x24cc   :  { %1729 = vrot.lane.b32.xlu0 %v2900_v41, %s2919_s0 }
0x253e   :  { %v1730_v57 = vpop.permute.xlu0 %1729 }
0x253f   :  { %v1732_v9 = vmul.f32 %v2898_v23, %v1730_v57 }
0x2541   :  { %v1966_v62 = vrot.slane %v1732_v9, 2  ;;  %1737 = vrot.lane.b32.xlu0 %v1732_v9, %s2919_s0  ;;  %1734 = vrot.lane.b32.xlu1 %v1732_v9, %s2923_s20 }
0x2543   :  { %v2773_v50 = vpack.i.bf16 %v1986_v7, %v1966_v62 }
0x25b3   :  { %v1738_v56 = vpop.permute.xlu0 %1737  ;;  %v3539_v21 = vpop.permute.xlu1 %1734 }
0x25b4   :  { %v1740_v0 = vsel %vm173_vm6, %v3539_v21, %v1738_v56 }
0x25b5   :  { %v1741_v2 = vsel %vm3073_vm8, %v1740_v0, 0.0 }
0x25b6   :  { %2539 = vmatmul.mubr.msk.f32.vlgmr.msra.gmra.mrb[18].mxu0 %vm182_vm9, %v1741_v2 }
0x25b7   :  { %2564 = vmatprep.mubr.msk.f32.mxu0 %vm2922_vm2, %v2918_v3 }
0x2689   :  { %v1814_v45 = vpop.f32.mrb[18].mxu0 }
0x268a   :  { %v1818_v1 = vadd.f32 %v1814_v45, %v3340_v31  ;;  %v2540_v39 = vpop.f32.mrb[19].mxu0 }
0x268c   :  { %2901 = vtanh.f32 %v1818_v1  ;;  %v2159_v40 = vmul.f32 -1.442695, %v1818_v1 }
0x268e   :  { %2903 = vpow2.f32 %v2159_v40 }
0x2696   :  { %v2902_v4 = vpop.eup %2901 }
0x2697   :  { %1828 = vrot.lane.b32.xlu1 %v2902_v4, %s2919_s0 }
0x2698   :  { %v2904_v6 = vpop.eup %2903 }
0x2699   :  { %v1822_v13 = vadd.f32 1.0, %v2904_v6 }
0x269b   :  { %2905 = vrcp.f32 %v1822_v13 }
0x26a5   :  { %v2906_v15 = vpop.eup %2905 }
0x26a6   :  { %v1826_v61 = vmul.f32 %v2906_v15, %v1726_v36 }
0x2709   :  { %v1829_v17 = vpop.permute.xlu1 %1828 }
0x270a   :  { %v1831_v11 = vmul.f32 %v2906_v15, %v1829_v17 }
0x270c   :  { %1833 = vrot.lane.b32.xlu0 %v1831_v11, %s2923_s20 }
0x277e   :  { %v1834_v3 = vpop.permute.xlu0 %1833 }
0x277f   :  { %v1836_v18 = vadd.f32 %v1834_v3, %v1826_v61 }
0x2781   :  { %2907 = vtanh.f32 %v1836_v18 }
0x278b   :  { %v2908_v31 = vpop.eup %2907 }
0x278c   :  { %1839 = vrot.lane.b32.xlu1 %v2908_v31, %s2919_s0 }
0x27fe   :  { %v1840_v19 = vpop.permute.xlu1 %1839 }
0x27ff   :  { %v1842_v20 = vmul.f32 %v2906_v15, %v1840_v19 }
0x2801   :  { %v1961_v12 = vrot.slane %v1842_v20, 2  ;;  %1847 = vrot.lane.b32.xlu1 %v1842_v20, %s2919_s0  ;;  %1844 = vrot.lane.b32.xlu0 %v1842_v20, %s2923_s20  ;;  %v2036_v20 = vsub.s32 2, %v2973_v10 }
0x2803   :  { %v2768_v26 = vpack.i.bf16 %v1981_v24, %v1961_v12  ;;  %v2037_v24 = vrot.slane %v2917_v53, %v2036_v20  ;;  %v2926_v12 = vmov 839922192  }
0x2873   :  { %v1848_v27 = vpop.permute.xlu1 %1847  ;;  %v1845_v48 = vpop.permute.xlu0 %1844 }
0x2874   :  { %v1850_v30 = vsel %vm173_vm6, %v1845_v48, %v1848_v27 }
0x2875   :  { %v1851_v29 = vsel %vm3073_vm8, %v1850_v30, 0.0 }
0x2876   :  { %2558 = vmatmul.mubr.msk.f32.vlgmr.msra.gmra.mrb[14].mxu1 %vm182_vm9, %v1851_v29 }
0x2949   :  { %v1926_v35 = vpop.f32.mrb[14].mxu1 }
0x294a   :  { %v1930_v37 = vadd.f32 %v1926_v35, %v3343_v34  ;;  %v2559_v25 = vpop.f32.mrb[15].mxu1 }
0x294c   :  { %2909 = vtanh.f32 %v1930_v37  ;;  %v2161_v43 = vmul.f32 -1.442695, %v1930_v37 }
0x294e   :  { %2911 = vpow2.f32 %v2161_v43 }
0x2956   :  { %v2910_v5 = vpop.eup %2909 }
0x2957   :  { %1940 = vrot.lane.b32.xlu0 %v2910_v5, %s2919_s0 }
0x2958   :  { %v2912_v46 = vpop.eup %2911 }
0x2959   :  { %v1934_v47 = vadd.f32 1.0, %v2912_v46 }
0x295b   :  { %2913 = vrcp.f32 %v1934_v47 }
0x2965   :  { %v2914_v49 = vpop.eup %2913 }
0x2966   :  { %v1938_v8 = vmul.f32 %v2914_v49, %v1836_v18 }
0x29c9   :  { %v1941_v28 = vpop.permute.xlu0 %1940 }
0x29ca   :  { %v1943_v51 = vmul.f32 %v2914_v49, %v1941_v28 }
0x29cc   :  { %1945 = vrot.lane.b32.xlu1 %v1943_v51, %s2923_s20 }
0x29d0   :  { %2769 = vrot.lane.b32.xlu1 %v2768_v26, %s2919_s0  ;;  %v2028_v26 = vunpack.c.l.s4 %v2926_v12 }
0x29d2   :  { %v2029_v27 = vunpack.c.0.s8 %v2028_v26 }
0x2a3e   :  { %v1946_v52 = vpop.permute.xlu1 %1945 }
0x2a3f   :  { %v1948_v34 = vadd.f32 %v1946_v52, %v1938_v8 }
0x2a41   :  { %2915 = vtanh.f32 %v1948_v34 }
0x2a42   :  { %v2770_v36 = vpop.permute.xlu1 %2769 }
0x2a43   :  { %v2772_v41 = vunpack.i.h.bf16 %v2770_v36  ;;  %v2771_v57 = vunpack.i.l.bf16 %v2770_v36 }
0x2a45   :  { %v1985_v62 = vsel %vm173_vm6, %v3539_v21, %v2772_v41 }
0x2a46   :  { %v2009_v39 = vrot.slane %v1985_v62, 6 }
0x2a4b   :  { %v2916_v58 = vpop.eup %2915 }
0x2a4c   :  { %1951 = vrot.lane.b32.xlu0 %v2916_v58, %s2919_s0 }
0x2a50   :  { %2774 = vrot.lane.b32.xlu0 %v2773_v50, %s2919_s0  ;;  %v1965_v50 = vsel %vm173_vm6, %v3436_v22, %v2771_v57 }
0x2a51   :  { %v2000_v4 = vrot.slane %v1965_v50, 6 }
0x2a54   :  { %2779 = vrot.lane.b32.xlu0 %v3487_v14, %s2919_s0 }
0x2a58   :  { %2024 = vperm.xlu0 %2788, %v2917_v53  }
0x2abe   :  { %v1952_v38 = vpop.permute.xlu0 %1951 }
0x2abf   :  { %v1954_v59 = vmul.f32 %v2914_v49, %v1952_v38 }
0x2ac1   :  { %v1956_v23 = vrot.slane %v1954_v59, 2 }
0x2ac2   :  { %v2775_v60 = vpop.permute.xlu0 %2774 }
0x2ac3   :  { %v2783_v42 = vpack.i.bf16 %v1971_v33, %v1956_v23  ;;  %v2776_v9 = vunpack.i.l.bf16 %v2775_v60  ;;  %v2777_v7 = vunpack.i.h.bf16 %v2775_v60 }
0x2ac5   :  { %2784 = vrot.lane.b32.xlu1 %v2783_v42, %s2919_s0  ;;  %v1970_v56 = vsel %vm173_vm6, %v3463_v54, %v2776_v9  ;;  %v1990_v40 = vsel %vm173_vm6, %v1845_v48, %v2777_v7  ;;  %v2032_v48 = vsub.s32 %v2029_v27, %v2973_v10 }
0x2ac6   :  { %v2780_v14 = vpop.permute.xlu0 %2779  ;;  %v2003_v6 = vrot.slane %v1970_v56, 4  ;;  %v2012_v11 = vrot.slane %v1990_v40, 4 }
0x2ac7   :  { %v2781_v44 = vunpack.i.l.bf16 %v2780_v14  ;;  %v2782_v13 = vunpack.i.h.bf16 %v2780_v14 }
0x2ac9   :  { %1991 = vrot.lane.b32.xlu1 %v1954_v59, %s2923_s20  ;;  %v1980_v2 = vsel %vm173_vm6, %v3516_v32, %v2781_v44 }
0x2aca   :  { %v2020_v54 = vsel %vm146_vm1, %v1980_v2, %v2009_v39 }
0x2acb   :  { %v2021_v31 = vsel %vm1016_vm11, %v2020_v54, %v2012_v11 }
0x2ad7   :  { %v2025_v30 = vpop.permute.xlu0 %2024 }
0x2ad8   :  { %v2033_v29 = vrot.slane %v2025_v30, %v2032_v48 }
0x2ada   :  { %v2042_v35 = vrot.slane %v2033_v29, %v2036_v20 }
0x2b37   :  { %v2785_v0 = vpop.permute.xlu1 %2784 }
0x2b38   :  { %v2787_v45 = vunpack.i.h.bf16 %v2785_v0  ;;  %v2786_v1 = vunpack.i.l.bf16 %v2785_v0 }
0x2b3a   :  { %v1975_v21 = vsel %vm173_vm6, %v3489_v16, %v2787_v45  ;;  %v1960_v22 = vsel %vm173_vm6, %v3409_v63, %v2786_v1 }
0x2b3b   :  { %v2006_v15 = vrot.slane %v1975_v21, 2  ;;  %v2017_v17 = vsel %vm146_vm1, %v1960_v22, %v2000_v4  ;;  %v1992_v32 = vpop.permute.xlu1 %1991 }
0x2b3c   :  { %v1998_v61 = vsel %vm173_vm6, %v1992_v32, %v2782_v13  ;;  %v2018_v3 = vsel %vm1016_vm11, %v2017_v17, %v2003_v6 }
0x2b3d   :  { %v2015_v18 = vrot.slane %v1998_v61, 2  ;;  %v2019_v19 = vsel %vm1018_vm10, %v2018_v3, %v2006_v15 }
0x2b3f   :  { %v2022_v16 = vsel %vm1018_vm10, %v2021_v31, %v2015_v18 }
0x2b40   :  { %v2756_v63 = vpack.c.bf16 %v2022_v16, %v2019_v19 }
0x2b42   :  { %2758 = vmatpush3.bf16.xpose.msk.msra.mxu0 %vm2757_vm12, %v2756_v63 }
0x2b49   :  { %2565 = vmatmul.mubr.msk.f32.vlgmr.msra.gmra.mrb[20].mxu0 %vm182_vm9, %v2037_v24 }
0x2c1c   :  { %v2118_v37 = vpop.f32.mrb[20].mxu0 }
0x2c1d   :  { %v2119_v25 = vadd.f32 %v2118_v37, %v2042_v35  ;;  %v2566_v5 = vpop.f32.mrb[21].mxu0 }
0x2c1f   :  { %2123 = vst.msk [vmem:[%s3605_s4] sm:$0x1] %vm2122_vm13, %v2119_v25 }

</bundles_post_ra>
